<compile_context>
chip_gen: v6e
topology: v6e:2x2x1
jax: 0.10.0
libtpu: 0.0.40
codegen_flags: <defaults>
</compile_context>

<pallas_src>
import jax
import jax.numpy as jnp
from jax import lax
from jax.experimental import pallas as pl
from jax.experimental.pallas import tpu as pltpu


# ------------------------------------------------------------------
# Fused Pallas kernel (one image per grid step)
# ------------------------------------------------------------------
def _sel_matrices(out_dim, in_dim):
    """Exact 0/1 matrices picking even / odd rows: Se @ v == v[0::2, :]."""
    rows = lax.broadcasted_iota(jnp.int32, (out_dim, in_dim), 0)
    cols = lax.broadcasted_iota(jnp.int32, (out_dim, in_dim), 1)
    se = (cols == 2 * rows).astype(jnp.float32)
    so = (cols == 2 * rows + 1).astype(jnp.float32)
    return se, so


def _fused_cnn_kernel(x_ref, w1_ref, b1_ref, w2_ref, b2_ref, wfc_ref, bfc_ref,
                      out_ref, xpad_ref, p1pad_ref):
    f32 = jnp.float32
    H = x_ref.shape[1]            # 28
    W = x_ref.shape[2]            # 28
    C1 = b1_ref.shape[1]          # 8
    C2 = b2_ref.shape[1]          # 16
    H1, W1 = H // 2, W // 2       # 14, 14
    H2, W2 = H1 // 2, W1 // 2     # 7, 7

    # Hoisted constants (computed once per image, reused inside both loops).
    se1, so1 = _sel_matrices(W1, W)     # [14, 28]
    se2, so2 = _sel_matrices(W2, W1)    # [7, 14]
    b1 = b1_ref[...]                    # [1, C1]
    b2 = b2_ref[...]                    # [1, C2]

    # Zero-padded input / pooled-conv1 activations, resident in VMEM.
    xpad_ref[...] = jnp.zeros_like(xpad_ref)
    p1pad_ref[...] = jnp.zeros_like(p1pad_ref)
    xpad_ref[pl.ds(1, H), pl.ds(1, W), :] = x_ref[0]          # [H, W, 1]

    # ---- conv1 (1->8, 3x3, pad 1) + ReLU + 2x2 maxpool --------------------
    def conv1_row(h):                   # one conv1 output row -> [W, C1]
        acc = jnp.zeros((W, C1), f32) + b1
        for dy in range(3):
            for dx in range(3):
                k = dy * 3 + dx
                col = xpad_ref[h + dy, pl.ds(dx, W), :]       # [W, 1]
                acc = acc + col * w1_ref[k:k + 1, :]          # VPU broadcast FMA
        return jnp.maximum(acc, 0.0)

    def pool1_body(i, carry):
        hmax = jnp.maximum(conv1_row(2 * i), conv1_row(2 * i + 1))   # [W, C1]
        pooled = jnp.maximum(jnp.dot(se1, hmax, preferred_element_type=f32),
                             jnp.dot(so1, hmax, preferred_element_type=f32))
        p1pad_ref[i + 1, pl.ds(1, W1), :] = pooled                   # [W1, C1]
        return carry

    lax.fori_loop(0, H1, pool1_body, 0)

    # ---- conv2 (8->16) + ReLU + 2x2 maxpool + fc (fused, (h,w,c) order) ----
    def conv2_row(h):                   # one conv2 output row -> [W1, C2]
        acc = jnp.zeros((W1, C2), f32) + b2
        for dy in range(3):
            for dx in range(3):
                k = dy * 3 + dx
                patch = p1pad_ref[h + dy, pl.ds(dx, W1), :]   # [W1, C1]
                acc = acc + jnp.dot(patch, w2_ref[k],
                                    preferred_element_type=f32)
        return jnp.maximum(acc, 0.0)

    def pool2_fc_body(i, logits):
        hmax = jnp.maximum(conv2_row(2 * i), conv2_row(2 * i + 1))   # [W1, C2]
        pooled = jnp.maximum(jnp.dot(se2, hmax, preferred_element_type=f32),
                             jnp.dot(so2, hmax, preferred_element_type=f32))
        for w in range(W2):                                          # [W2, C2]
            logits = logits + jnp.dot(pooled[w:w + 1, :],
                                      wfc_ref[i * W2 + w],
                                      preferred_element_type=f32)    # [1, nc]
        return logits

    logits = lax.fori_loop(0, H2, pool2_fc_body, bfc_ref[...])
    out_ref[0] = logits


# ------------------------------------------------------------------
# Parameter preparation (done ONCE, outside the per-step forward)
# ------------------------------------------------------------------
def prepare_params(params):
    """Rearrange PyTorch-layout parameters into the kernel's layouts."""
    w1, b1, w2, b2, wfc, bfc = params
    c1, cin = w1.shape[0], w1.shape[1]
    c2, ci2 = w2.shape[0], w2.shape[1]
    nc = wfc.shape[0]
    assert cin == 1, "SimpleCnn spec has input_channel = 1"
    assert ci2 == c1 and wfc.shape[1] == c2 * 7 * 7

    w1m = w1.reshape(c1, 9).T                                    # [9, C1]  (k, co)
    w2m = w2.transpose(2, 3, 1, 0).reshape(9, c1, c2)            # [9, C1, C2]
    # fc weight: PyTorch feature index = c*49 + h*7 + w  ->  rows ordered (h*7+w, c)
    wfcm = wfc.reshape(nc, c2, 7, 7).transpose(2, 3, 1, 0).reshape(49, c2, nc)
    return (w1m, b1.reshape(1, c1), w2m, b2.reshape(1, c2),
            wfcm, bfc.reshape(1, nc))


# ------------------------------------------------------------------
# Forward pass (one fused pallas_call)
# ------------------------------------------------------------------
@jax.jit
def simple_cnn_forward(x_nchw, prepared):
    w1m, b1m, w2m, b2m, wfcm, bfcm = prepared
    B, cin, H, W = x_nchw.shape
    nc = bfcm.shape[1]
    c1 = b1m.shape[1]
    x_nhwc = jnp.transpose(x_nchw, (0, 2, 3, 1))   # [B, H, W, 1] (C=1: layout no-op)

    out = pl.pallas_call(
        _fused_cnn_kernel,
        out_shape=jax.ShapeDtypeStruct((B, 1, nc), jnp.float32),
        grid_spec=pltpu.PrefetchScalarGridSpec(
            num_scalar_prefetch=0,
            grid=(B,),
            in_specs=[
                pl.BlockSpec((1, H, W, 1), lambda b: (b, 0, 0, 0)),
                pl.BlockSpec(w1m.shape, lambda b: (0, 0)),
                pl.BlockSpec(b1m.shape, lambda b: (0, 0)),
                pl.BlockSpec(w2m.shape, lambda b: (0, 0, 0)),
                pl.BlockSpec(b2m.shape, lambda b: (0, 0)),
                pl.BlockSpec(wfcm.shape, lambda b: (0, 0, 0)),
                pl.BlockSpec(bfcm.shape, lambda b: (0, 0)),
            ],
            out_specs=pl.BlockSpec((1, 1, nc), lambda b: (b, 0, 0)),
            scratch_shapes=[
                pltpu.VMEM((H + 2, W + 2, 1), jnp.float32),          # padded input
                pltpu.VMEM((H // 2 + 2, W // 2 + 2, c1), jnp.float32)  # padded pool1
            ]),
        compiler_params=pltpu.CompilerParams(
            dimension_semantics=("parallel",)),
    )(x_nhwc, w1m, b1m, w2m, b2m, wfcm, bfcm)
    return out.reshape(B, nc)


# ------------------------------------------------------------------
# Pure-JAX reference (for correctness check)
# ------------------------------------------------------------------
def reference_forward(x_nchw, params):
    w1, b1, w2, b2, wfc, bfc = params
    dn = ("NCHW", "OIHW", "NCHW")

    def conv_relu(x, w, b):
        y = lax.conv_general_dilated(x, w, (1, 1), ((1, 1), (1, 1)),
                                     dimension_numbers=dn)
        return jax.nn.relu(y + b[None, :, None, None])

    def pool(y):
        return lax.reduce_window(y, -jnp.inf, lax.max,
                                 (1, 1, 2, 2), (1, 1, 2, 2), "VALID")

    y = pool(conv_relu(x_nchw, w1, b1))
    y = pool(conv_relu(y, w2, b2))
    y = y.reshape(y.shape[0], -1)
    return y @ wfc.T + bfc


# ------------------------------------------------------------------
# Main
# ------------------------------------------------------------------
if __name__ == "__main__":
    num_classes = 10
    B, Cin, H, W = 2, 1, 28, 28   # 28x28 required so fc in_features = 16*7*7

    key = jax.random.PRNGKey(0)
    k_x, k1, k2, k3, k4, k5, k6 = jax.random.split(key, 7)

    x = jax.random.normal(k_x, (B, Cin, H, W), dtype=jnp.float32)

    # deterministic synthetic parameters (PyTorch shapes)
    w1 = 0.1 * jax.random.normal(k1, (8, Cin, 3, 3), dtype=jnp.float32)
    b1 = 0.1 * jax.random.normal(k2, (8,), dtype=jnp.float32)
    w2 = 0.1 * jax.random.normal(k3, (16, 8, 3, 3), dtype=jnp.float32)
    b2 = 0.1 * jax.random.normal(k4, (16,), dtype=jnp.float32)
    wfc = 0.1 * jax.random.normal(k5, (num_classes, 16 * 7 * 7), dtype=jnp.float32)
    bfc = 0.1 * jax.random.normal(k6, (num_classes,), dtype=jnp.float32)
    params = (w1, b1, w2, b2, wfc, bfc)

    prepared = prepare_params(params)           # one-time weight layout prep
    logits = simple_cnn_forward(x, prepared)
    logits = jax.block_until_ready(logits)

    ref = jax.block_until_ready(reference_forward(x, params))
    assert logits.shape == (B, num_classes)
    max_err = jnp.max(jnp.abs(logits - ref))
    assert jnp.allclose(logits, ref, rtol=1e-3, atol=1e-3), f"max abs err {max_err}"

    print("KERNEL_OK")
</pallas_src>

<mosaic_0001>
module attributes {stable_mosaic.version = 11 : i64} {
  func.func @_fused_cnn_kernel(%arg0: i32, %arg1: memref<1x28x28x1xf32, #tpu.memory_space<vmem>>, %arg2: memref<9x8xf32, #tpu.memory_space<vmem>>, %arg3: memref<1x8xf32, #tpu.memory_space<vmem>>, %arg4: memref<9x8x16xf32, #tpu.memory_space<vmem>>, %arg5: memref<1x16xf32, #tpu.memory_space<vmem>>, %arg6: memref<49x16x10xf32, #tpu.memory_space<vmem>>, %arg7: memref<1x10xf32, #tpu.memory_space<vmem>>, %arg8: memref<1x1x10xf32, #tpu.memory_space<vmem>>, %arg9: memref<30x30x1xf32, #tpu.memory_space<vmem>>, %arg10: memref<16x16x8xf32, #tpu.memory_space<vmem>>) attributes {dimension_semantics = [#tpu.dimension_semantics<parallel>], iteration_bounds = array<i64: 2>, scalar_prefetch = 0 : i64, scratch_operands = 2 : i64, tpu.core_type = #tpu.core_type<tc>, window_params = [{transform_indices = @transform_0, window_bounds = array<i64: 1, 28, 28, 1>}, {pipeline_mode = #tpu.pipeline_mode<synchronous>, transform_indices = @transform_1, window_bounds = array<i64: 9, 8>}, {pipeline_mode = #tpu.pipeline_mode<synchronous>, transform_indices = @transform_2, window_bounds = array<i64: 1, 8>}, {pipeline_mode = #tpu.pipeline_mode<synchronous>, transform_indices = @transform_3, window_bounds = array<i64: 9, 8, 16>}, {pipeline_mode = #tpu.pipeline_mode<synchronous>, transform_indices = @transform_4, window_bounds = array<i64: 1, 16>}, {pipeline_mode = #tpu.pipeline_mode<synchronous>, transform_indices = @transform_5, window_bounds = array<i64: 49, 16, 10>}, {pipeline_mode = #tpu.pipeline_mode<synchronous>, transform_indices = @transform_6, window_bounds = array<i64: 1, 10>}, {transform_indices = @transform_7, window_bounds = array<i64: 1, 1, 10>}]} {
    %0 = tpu.iota {dimensions = array<i32: 0>} : vector<14x28xi32>
    %1 = tpu.iota {dimensions = array<i32: 1>} : vector<14x28xi32>
    %c2_i32 = arith.constant 2 : i32
    %2 = vector.broadcast %c2_i32 : i32 to vector<14x28xi32>
    %3 = arith.muli %2, %0 : vector<14x28xi32>
    %4 = arith.cmpi eq, %1, %3 : vector<14x28xi32>
    %5 = arith.extui %4 : vector<14x28xi1> to vector<14x28xi32>
    %6 = arith.sitofp %5 : vector<14x28xi32> to vector<14x28xf32>
    %c2_i32_0 = arith.constant 2 : i32
    %7 = vector.broadcast %c2_i32_0 : i32 to vector<14x28xi32>
    %8 = arith.muli %7, %0 : vector<14x28xi32>
    %c1_i32 = arith.constant 1 : i32
    %9 = vector.broadcast %c1_i32 : i32 to vector<14x28xi32>
    %10 = arith.addi %8, %9 : vector<14x28xi32>
    %11 = arith.cmpi eq, %1, %10 : vector<14x28xi32>
    %12 = arith.extui %11 : vector<14x28xi1> to vector<14x28xi32>
    %13 = arith.sitofp %12 : vector<14x28xi32> to vector<14x28xf32>
    %14 = tpu.iota {dimensions = array<i32: 0>} : vector<7x14xi32>
    %15 = tpu.iota {dimensions = array<i32: 1>} : vector<7x14xi32>
    %c2_i32_1 = arith.constant 2 : i32
    %16 = vector.broadcast %c2_i32_1 : i32 to vector<7x14xi32>
    %17 = arith.muli %16, %14 : vector<7x14xi32>
    %18 = arith.cmpi eq, %15, %17 : vector<7x14xi32>
    %19 = arith.extui %18 : vector<7x14xi1> to vector<7x14xi32>
    %20 = arith.sitofp %19 : vector<7x14xi32> to vector<7x14xf32>
    %c2_i32_2 = arith.constant 2 : i32
    %21 = vector.broadcast %c2_i32_2 : i32 to vector<7x14xi32>
    %22 = arith.muli %21, %14 : vector<7x14xi32>
    %c1_i32_3 = arith.constant 1 : i32
    %23 = vector.broadcast %c1_i32_3 : i32 to vector<7x14xi32>
    %24 = arith.addi %22, %23 : vector<7x14xi32>
    %25 = arith.cmpi eq, %15, %24 : vector<7x14xi32>
    %26 = arith.extui %25 : vector<7x14xi1> to vector<7x14xi32>
    %27 = arith.sitofp %26 : vector<7x14xi32> to vector<7x14xf32>
    %c0 = arith.constant 0 : index
    %c0_4 = arith.constant 0 : index
    %28 = vector.load %arg3[%c0, %c0_4] : memref<1x8xf32, #tpu.memory_space<vmem>>, vector<1x8xf32>
    %c0_5 = arith.constant 0 : index
    %c0_6 = arith.constant 0 : index
    %29 = vector.load %arg5[%c0_5, %c0_6] : memref<1x16xf32, #tpu.memory_space<vmem>>, vector<1x16xf32>
    %cst = arith.constant 0.000000e+00 : f32
    %30 = vector.broadcast %cst : f32 to vector<30x30x1xf32>
    %c0_7 = arith.constant 0 : index
    %c0_8 = arith.constant 0 : index
    %c0_9 = arith.constant 0 : index
    %31 = vector.load %arg9[%c0_7, %c0_8, %c0_9] : memref<30x30x1xf32, #tpu.memory_space<vmem>>, vector<30x30x1xf32>
    tpu.vector_store %arg9[%c0_7, %c0_8, %c0_9], %30 {strides = array<i32>} : memref<30x30x1xf32, #tpu.memory_space<vmem>>, vector<30x30x1xf32>,
    %cst_10 = arith.constant 0.000000e+00 : f32
    %32 = vector.broadcast %cst_10 : f32 to vector<16x16x8xf32>
    %c0_11 = arith.constant 0 : index
    %c0_12 = arith.constant 0 : index
    %c0_13 = arith.constant 0 : index
    %33 = vector.load %arg10[%c0_11, %c0_12, %c0_13] : memref<16x16x8xf32, #tpu.memory_space<vmem>>, vector<16x16x8xf32>
    tpu.vector_store %arg10[%c0_11, %c0_12, %c0_13], %32 {strides = array<i32>} : memref<16x16x8xf32, #tpu.memory_space<vmem>>, vector<16x16x8xf32>,
    %c0_14 = arith.constant 0 : index
    %c0_15 = arith.constant 0 : index
    %c0_16 = arith.constant 0 : index
    %c0_17 = arith.constant 0 : index
    %34 = vector.load %arg1[%c0_14, %c0_15, %c0_16, %c0_17] : memref<1x28x28x1xf32, #tpu.memory_space<vmem>>, vector<1x28x28x1xf32>
    %35 = vector.shape_cast %34 : vector<1x28x28x1xf32> to vector<28x28x1xf32>
    %c1 = arith.constant 1 : index
    %c1_18 = arith.constant 1 : index
    %c0_19 = arith.constant 0 : index
    %36 = vector.load %arg9[%c1, %c1_18, %c0_19] : memref<30x30x1xf32, #tpu.memory_space<vmem>>, vector<28x28x1xf32>
    tpu.vector_store %arg9[%c1, %c1_18, %c0_19], %35 {strides = array<i32>} : memref<30x30x1xf32, #tpu.memory_space<vmem>>, vector<28x28x1xf32>,
    %c0_i32 = arith.constant 0 : i32
    %c14_i32 = arith.constant 14 : i32
    %37 = arith.addi %c0_i32, %c14_i32 : i32
    %c1_i32_20 = arith.constant 1 : i32
    scf.for %arg11 = %c0_i32 to %37 step %c1_i32_20  : i32 {
      %c2_i32_30 = arith.constant 2 : i32
      %44 = arith.muli %c2_i32_30, %arg11 : i32
      %cst_31 = arith.constant 0.000000e+00 : f32
      %45 = vector.broadcast %cst_31 : f32 to vector<28x8xf32>
      %46 = vector.broadcast %28 : vector<1x8xf32> to vector<28x8xf32>
      %47 = arith.addf %45, %46 : vector<28x8xf32>
      %c0_i32_32 = arith.constant 0 : i32
      %48 = arith.addi %44, %c0_i32_32 : i32
      %49 = arith.index_cast %48 : i32 to index
      %c0_33 = arith.constant 0 : index
      %c0_34 = arith.constant 0 : index
      %50 = vector.load %arg9[%49, %c0_33, %c0_34] : memref<30x30x1xf32, #tpu.memory_space<vmem>>, vector<1x28x1xf32>
      %51 = vector.shape_cast %50 : vector<1x28x1xf32> to vector<28x1xf32>
      %c0_35 = arith.constant 0 : index
      %c0_36 = arith.constant 0 : index
      %52 = vector.load %arg2[%c0_35, %c0_36] : memref<9x8xf32, #tpu.memory_space<vmem>>, vector<1x8xf32>
      %53 = vector.broadcast %51 : vector<28x1xf32> to vector<28x8xf32>
      %54 = vector.broadcast %52 : vector<1x8xf32> to vector<28x8xf32>
      %55 = arith.mulf %53, %54 : vector<28x8xf32>
      %56 = arith.addf %47, %55 : vector<28x8xf32>
      %c0_i32_37 = arith.constant 0 : i32
      %57 = arith.addi %44, %c0_i32_37 : i32
      %58 = arith.index_cast %57 : i32 to index
      %c1_38 = arith.constant 1 : index
      %c0_39 = arith.constant 0 : index
      %59 = vector.load %arg9[%58, %c1_38, %c0_39] : memref<30x30x1xf32, #tpu.memory_space<vmem>>, vector<1x28x1xf32>
      %60 = vector.shape_cast %59 : vector<1x28x1xf32> to vector<28x1xf32>
      %c1_40 = arith.constant 1 : index
      %c0_41 = arith.constant 0 : index
      %61 = vector.load %arg2[%c1_40, %c0_41] : memref<9x8xf32, #tpu.memory_space<vmem>>, vector<1x8xf32>
      %62 = vector.broadcast %60 : vector<28x1xf32> to vector<28x8xf32>
      %63 = vector.broadcast %61 : vector<1x8xf32> to vector<28x8xf32>
      %64 = arith.mulf %62, %63 : vector<28x8xf32>
      %65 = arith.addf %56, %64 : vector<28x8xf32>
      %c0_i32_42 = arith.constant 0 : i32
      %66 = arith.addi %44, %c0_i32_42 : i32
      %67 = arith.index_cast %66 : i32 to index
      %c2 = arith.constant 2 : index
      %c0_43 = arith.constant 0 : index
      %68 = vector.load %arg9[%67, %c2, %c0_43] : memref<30x30x1xf32, #tpu.memory_space<vmem>>, vector<1x28x1xf32>
      %69 = vector.shape_cast %68 : vector<1x28x1xf32> to vector<28x1xf32>
      %c2_44 = arith.constant 2 : index
      %c0_45 = arith.constant 0 : index
      %70 = vector.load %arg2[%c2_44, %c0_45] : memref<9x8xf32, #tpu.memory_space<vmem>>, vector<1x8xf32>
      %71 = vector.broadcast %69 : vector<28x1xf32> to vector<28x8xf32>
      %72 = vector.broadcast %70 : vector<1x8xf32> to vector<28x8xf32>
      %73 = arith.mulf %71, %72 : vector<28x8xf32>
      %74 = arith.addf %65, %73 : vector<28x8xf32>
      %c1_i32_46 = arith.constant 1 : i32
      %75 = arith.addi %44, %c1_i32_46 : i32
      %76 = arith.index_cast %75 : i32 to index
      %c0_47 = arith.constant 0 : index
      %c0_48 = arith.constant 0 : index
      %77 = vector.load %arg9[%76, %c0_47, %c0_48] : memref<30x30x1xf32, #tpu.memory_space<vmem>>, vector<1x28x1xf32>
      %78 = vector.shape_cast %77 : vector<1x28x1xf32> to vector<28x1xf32>
      %c3 = arith.constant 3 : index
      %c0_49 = arith.constant 0 : index
      %79 = vector.load %arg2[%c3, %c0_49] : memref<9x8xf32, #tpu.memory_space<vmem>>, vector<1x8xf32>
      %80 = vector.broadcast %78 : vector<28x1xf32> to vector<28x8xf32>
      %81 = vector.broadcast %79 : vector<1x8xf32> to vector<28x8xf32>
      %82 = arith.mulf %80, %81 : vector<28x8xf32>
      %83 = arith.addf %74, %82 : vector<28x8xf32>
      %c1_i32_50 = arith.constant 1 : i32
      %84 = arith.addi %44, %c1_i32_50 : i32
      %85 = arith.index_cast %84 : i32 to index
      %c1_51 = arith.constant 1 : index
      %c0_52 = arith.constant 0 : index
      %86 = vector.load %arg9[%85, %c1_51, %c0_52] : memref<30x30x1xf32, #tpu.memory_space<vmem>>, vector<1x28x1xf32>
      %87 = vector.shape_cast %86 : vector<1x28x1xf32> to vector<28x1xf32>
      %c4 = arith.constant 4 : index
      %c0_53 = arith.constant 0 : index
      %88 = vector.load %arg2[%c4, %c0_53] : memref<9x8xf32, #tpu.memory_space<vmem>>, vector<1x8xf32>
      %89 = vector.broadcast %87 : vector<28x1xf32> to vector<28x8xf32>
      %90 = vector.broadcast %88 : vector<1x8xf32> to vector<28x8xf32>
      %91 = arith.mulf %89, %90 : vector<28x8xf32>
      %92 = arith.addf %83, %91 : vector<28x8xf32>
      %c1_i32_54 = arith.constant 1 : i32
      %93 = arith.addi %44, %c1_i32_54 : i32
      %94 = arith.index_cast %93 : i32 to index
      %c2_55 = arith.constant 2 : index
      %c0_56 = arith.constant 0 : index
      %95 = vector.load %arg9[%94, %c2_55, %c0_56] : memref<30x30x1xf32, #tpu.memory_space<vmem>>, vector<1x28x1xf32>
      %96 = vector.shape_cast %95 : vector<1x28x1xf32> to vector<28x1xf32>
      %c5 = arith.constant 5 : index
      %c0_57 = arith.constant 0 : index
      %97 = vector.load %arg2[%c5, %c0_57] : memref<9x8xf32, #tpu.memory_space<vmem>>, vector<1x8xf32>
      %98 = vector.broadcast %96 : vector<28x1xf32> to vector<28x8xf32>
      %99 = vector.broadcast %97 : vector<1x8xf32> to vector<28x8xf32>
      %100 = arith.mulf %98, %99 : vector<28x8xf32>
      %101 = arith.addf %92, %100 : vector<28x8xf32>
      %c2_i32_58 = arith.constant 2 : i32
      %102 = arith.addi %44, %c2_i32_58 : i32
      %103 = arith.index_cast %102 : i32 to index
      %c0_59 = arith.constant 0 : index
      %c0_60 = arith.constant 0 : index
      %104 = vector.load %arg9[%103, %c0_59, %c0_60] : memref<30x30x1xf32, #tpu.memory_space<vmem>>, vector<1x28x1xf32>
      %105 = vector.shape_cast %104 : vector<1x28x1xf32> to vector<28x1xf32>
      %c6 = arith.constant 6 : index
      %c0_61 = arith.constant 0 : index
      %106 = vector.load %arg2[%c6, %c0_61] : memref<9x8xf32, #tpu.memory_space<vmem>>, vector<1x8xf32>
      %107 = vector.broadcast %105 : vector<28x1xf32> to vector<28x8xf32>
      %108 = vector.broadcast %106 : vector<1x8xf32> to vector<28x8xf32>
      %109 = arith.mulf %107, %108 : vector<28x8xf32>
      %110 = arith.addf %101, %109 : vector<28x8xf32>
      %c2_i32_62 = arith.constant 2 : i32
      %111 = arith.addi %44, %c2_i32_62 : i32
      %112 = arith.index_cast %111 : i32 to index
      %c1_63 = arith.constant 1 : index
      %c0_64 = arith.constant 0 : index
      %113 = vector.load %arg9[%112, %c1_63, %c0_64] : memref<30x30x1xf32, #tpu.memory_space<vmem>>, vector<1x28x1xf32>
      %114 = vector.shape_cast %113 : vector<1x28x1xf32> to vector<28x1xf32>
      %c7 = arith.constant 7 : index
      %c0_65 = arith.constant 0 : index
      %115 = vector.load %arg2[%c7, %c0_65] : memref<9x8xf32, #tpu.memory_space<vmem>>, vector<1x8xf32>
      %116 = vector.broadcast %114 : vector<28x1xf32> to vector<28x8xf32>
      %117 = vector.broadcast %115 : vector<1x8xf32> to vector<28x8xf32>
      %118 = arith.mulf %116, %117 : vector<28x8xf32>
      %119 = arith.addf %110, %118 : vector<28x8xf32>
      %c2_i32_66 = arith.constant 2 : i32
      %120 = arith.addi %44, %c2_i32_66 : i32
      %121 = arith.index_cast %120 : i32 to index
      %c2_67 = arith.constant 2 : index
      %c0_68 = arith.constant 0 : index
      %122 = vector.load %arg9[%121, %c2_67, %c0_68] : memref<30x30x1xf32, #tpu.memory_space<vmem>>, vector<1x28x1xf32>
      %123 = vector.shape_cast %122 : vector<1x28x1xf32> to vector<28x1xf32>
      %c8 = arith.constant 8 : index
      %c0_69 = arith.constant 0 : index
      %124 = vector.load %arg2[%c8, %c0_69] : memref<9x8xf32, #tpu.memory_space<vmem>>, vector<1x8xf32>
      %125 = vector.broadcast %123 : vector<28x1xf32> to vector<28x8xf32>
      %126 = vector.broadcast %124 : vector<1x8xf32> to vector<28x8xf32>
      %127 = arith.mulf %125, %126 : vector<28x8xf32>
      %128 = arith.addf %119, %127 : vector<28x8xf32>
      %cst_70 = arith.constant 0.000000e+00 : f32
      %129 = vector.broadcast %cst_70 : f32 to vector<28x8xf32>
      %130 = arith.maximumf %128, %129 : vector<28x8xf32>
      %c2_i32_71 = arith.constant 2 : i32
      %131 = arith.muli %c2_i32_71, %arg11 : i32
      %c1_i32_72 = arith.constant 1 : i32
      %132 = arith.addi %131, %c1_i32_72 : i32
      %cst_73 = arith.constant 0.000000e+00 : f32
      %133 = vector.broadcast %cst_73 : f32 to vector<28x8xf32>
      %134 = vector.broadcast %28 : vector<1x8xf32> to vector<28x8xf32>
      %135 = arith.addf %133, %134 : vector<28x8xf32>
      %c0_i32_74 = arith.constant 0 : i32
      %136 = arith.addi %132, %c0_i32_74 : i32
      %137 = arith.index_cast %136 : i32 to index
      %c0_75 = arith.constant 0 : index
      %c0_76 = arith.constant 0 : index
      %138 = vector.load %arg9[%137, %c0_75, %c0_76] : memref<30x30x1xf32, #tpu.memory_space<vmem>>, vector<1x28x1xf32>
      %139 = vector.shape_cast %138 : vector<1x28x1xf32> to vector<28x1xf32>
      %c0_77 = arith.constant 0 : index
      %c0_78 = arith.constant 0 : index
      %140 = vector.load %arg2[%c0_77, %c0_78] : memref<9x8xf32, #tpu.memory_space<vmem>>, vector<1x8xf32>
      %141 = vector.broadcast %139 : vector<28x1xf32> to vector<28x8xf32>
      %142 = vector.broadcast %140 : vector<1x8xf32> to vector<28x8xf32>
      %143 = arith.mulf %141, %142 : vector<28x8xf32>
      %144 = arith.addf %135, %143 : vector<28x8xf32>
      %c0_i32_79 = arith.constant 0 : i32
      %145 = arith.addi %132, %c0_i32_79 : i32
      %146 = arith.index_cast %145 : i32 to index
      %c1_80 = arith.constant 1 : index
      %c0_81 = arith.constant 0 : index
      %147 = vector.load %arg9[%146, %c1_80, %c0_81] : memref<30x30x1xf32, #tpu.memory_space<vmem>>, vector<1x28x1xf32>
      %148 = vector.shape_cast %147 : vector<1x28x1xf32> to vector<28x1xf32>
      %c1_82 = arith.constant 1 : index
      %c0_83 = arith.constant 0 : index
      %149 = vector.load %arg2[%c1_82, %c0_83] : memref<9x8xf32, #tpu.memory_space<vmem>>, vector<1x8xf32>
      %150 = vector.broadcast %148 : vector<28x1xf32> to vector<28x8xf32>
      %151 = vector.broadcast %149 : vector<1x8xf32> to vector<28x8xf32>
      %152 = arith.mulf %150, %151 : vector<28x8xf32>
      %153 = arith.addf %144, %152 : vector<28x8xf32>
      %c0_i32_84 = arith.constant 0 : i32
      %154 = arith.addi %132, %c0_i32_84 : i32
      %155 = arith.index_cast %154 : i32 to index
      %c2_85 = arith.constant 2 : index
      %c0_86 = arith.constant 0 : index
      %156 = vector.load %arg9[%155, %c2_85, %c0_86] : memref<30x30x1xf32, #tpu.memory_space<vmem>>, vector<1x28x1xf32>
      %157 = vector.shape_cast %156 : vector<1x28x1xf32> to vector<28x1xf32>
      %c2_87 = arith.constant 2 : index
      %c0_88 = arith.constant 0 : index
      %158 = vector.load %arg2[%c2_87, %c0_88] : memref<9x8xf32, #tpu.memory_space<vmem>>, vector<1x8xf32>
      %159 = vector.broadcast %157 : vector<28x1xf32> to vector<28x8xf32>
      %160 = vector.broadcast %158 : vector<1x8xf32> to vector<28x8xf32>
      %161 = arith.mulf %159, %160 : vector<28x8xf32>
      %162 = arith.addf %153, %161 : vector<28x8xf32>
      %c1_i32_89 = arith.constant 1 : i32
      %163 = arith.addi %132, %c1_i32_89 : i32
      %164 = arith.index_cast %163 : i32 to index
      %c0_90 = arith.constant 0 : index
      %c0_91 = arith.constant 0 : index
      %165 = vector.load %arg9[%164, %c0_90, %c0_91] : memref<30x30x1xf32, #tpu.memory_space<vmem>>, vector<1x28x1xf32>
      %166 = vector.shape_cast %165 : vector<1x28x1xf32> to vector<28x1xf32>
      %c3_92 = arith.constant 3 : index
      %c0_93 = arith.constant 0 : index
      %167 = vector.load %arg2[%c3_92, %c0_93] : memref<9x8xf32, #tpu.memory_space<vmem>>, vector<1x8xf32>
      %168 = vector.broadcast %166 : vector<28x1xf32> to vector<28x8xf32>
      %169 = vector.broadcast %167 : vector<1x8xf32> to vector<28x8xf32>
      %170 = arith.mulf %168, %169 : vector<28x8xf32>
      %171 = arith.addf %162, %170 : vector<28x8xf32>
      %c1_i32_94 = arith.constant 1 : i32
      %172 = arith.addi %132, %c1_i32_94 : i32
      %173 = arith.index_cast %172 : i32 to index
      %c1_95 = arith.constant 1 : index
      %c0_96 = arith.constant 0 : index
      %174 = vector.load %arg9[%173, %c1_95, %c0_96] : memref<30x30x1xf32, #tpu.memory_space<vmem>>, vector<1x28x1xf32>
      %175 = vector.shape_cast %174 : vector<1x28x1xf32> to vector<28x1xf32>
      %c4_97 = arith.constant 4 : index
      %c0_98 = arith.constant 0 : index
      %176 = vector.load %arg2[%c4_97, %c0_98] : memref<9x8xf32, #tpu.memory_space<vmem>>, vector<1x8xf32>
      %177 = vector.broadcast %175 : vector<28x1xf32> to vector<28x8xf32>
      %178 = vector.broadcast %176 : vector<1x8xf32> to vector<28x8xf32>
      %179 = arith.mulf %177, %178 : vector<28x8xf32>
      %180 = arith.addf %171, %179 : vector<28x8xf32>
      %c1_i32_99 = arith.constant 1 : i32
      %181 = arith.addi %132, %c1_i32_99 : i32
      %182 = arith.index_cast %181 : i32 to index
      %c2_100 = arith.constant 2 : index
      %c0_101 = arith.constant 0 : index
      %183 = vector.load %arg9[%182, %c2_100, %c0_101] : memref<30x30x1xf32, #tpu.memory_space<vmem>>, vector<1x28x1xf32>
      %184 = vector.shape_cast %183 : vector<1x28x1xf32> to vector<28x1xf32>
      %c5_102 = arith.constant 5 : index
      %c0_103 = arith.constant 0 : index
      %185 = vector.load %arg2[%c5_102, %c0_103] : memref<9x8xf32, #tpu.memory_space<vmem>>, vector<1x8xf32>
      %186 = vector.broadcast %184 : vector<28x1xf32> to vector<28x8xf32>
      %187 = vector.broadcast %185 : vector<1x8xf32> to vector<28x8xf32>
      %188 = arith.mulf %186, %187 : vector<28x8xf32>
      %189 = arith.addf %180, %188 : vector<28x8xf32>
      %c2_i32_104 = arith.constant 2 : i32
      %190 = arith.addi %132, %c2_i32_104 : i32
      %191 = arith.index_cast %190 : i32 to index
      %c0_105 = arith.constant 0 : index
      %c0_106 = arith.constant 0 : index
      %192 = vector.load %arg9[%191, %c0_105, %c0_106] : memref<30x30x1xf32, #tpu.memory_space<vmem>>, vector<1x28x1xf32>
      %193 = vector.shape_cast %192 : vector<1x28x1xf32> to vector<28x1xf32>
      %c6_107 = arith.constant 6 : index
      %c0_108 = arith.constant 0 : index
      %194 = vector.load %arg2[%c6_107, %c0_108] : memref<9x8xf32, #tpu.memory_space<vmem>>, vector<1x8xf32>
      %195 = vector.broadcast %193 : vector<28x1xf32> to vector<28x8xf32>
      %196 = vector.broadcast %194 : vector<1x8xf32> to vector<28x8xf32>
      %197 = arith.mulf %195, %196 : vector<28x8xf32>
      %198 = arith.addf %189, %197 : vector<28x8xf32>
      %c2_i32_109 = arith.constant 2 : i32
      %199 = arith.addi %132, %c2_i32_109 : i32
      %200 = arith.index_cast %199 : i32 to index
      %c1_110 = arith.constant 1 : index
      %c0_111 = arith.constant 0 : index
      %201 = vector.load %arg9[%200, %c1_110, %c0_111] : memref<30x30x1xf32, #tpu.memory_space<vmem>>, vector<1x28x1xf32>
      %202 = vector.shape_cast %201 : vector<1x28x1xf32> to vector<28x1xf32>
      %c7_112 = arith.constant 7 : index
      %c0_113 = arith.constant 0 : index
      %203 = vector.load %arg2[%c7_112, %c0_113] : memref<9x8xf32, #tpu.memory_space<vmem>>, vector<1x8xf32>
      %204 = vector.broadcast %202 : vector<28x1xf32> to vector<28x8xf32>
      %205 = vector.broadcast %203 : vector<1x8xf32> to vector<28x8xf32>
      %206 = arith.mulf %204, %205 : vector<28x8xf32>
      %207 = arith.addf %198, %206 : vector<28x8xf32>
      %c2_i32_114 = arith.constant 2 : i32
      %208 = arith.addi %132, %c2_i32_114 : i32
      %209 = arith.index_cast %208 : i32 to index
      %c2_115 = arith.constant 2 : index
      %c0_116 = arith.constant 0 : index
      %210 = vector.load %arg9[%209, %c2_115, %c0_116] : memref<30x30x1xf32, #tpu.memory_space<vmem>>, vector<1x28x1xf32>
      %211 = vector.shape_cast %210 : vector<1x28x1xf32> to vector<28x1xf32>
      %c8_117 = arith.constant 8 : index
      %c0_118 = arith.constant 0 : index
      %212 = vector.load %arg2[%c8_117, %c0_118] : memref<9x8xf32, #tpu.memory_space<vmem>>, vector<1x8xf32>
      %213 = vector.broadcast %211 : vector<28x1xf32> to vector<28x8xf32>
      %214 = vector.broadcast %212 : vector<1x8xf32> to vector<28x8xf32>
      %215 = arith.mulf %213, %214 : vector<28x8xf32>
      %216 = arith.addf %207, %215 : vector<28x8xf32>
      %cst_119 = arith.constant 0.000000e+00 : f32
      %217 = vector.broadcast %cst_119 : f32 to vector<28x8xf32>
      %218 = arith.maximumf %216, %217 : vector<28x8xf32>
      %219 = arith.maximumf %130, %218 : vector<28x8xf32>
      %cst_120 = arith.constant dense<0.000000e+00> : vector<14x8xf32>
      %220 = tpu.matmul %6, %219, %cst_120 {dimension_numbers = #tpu.dot_dimension_numbers<[1], [0], [0], [1], [0, 0, 1, 1], [], []>} : vector<14x28xf32>, vector<28x8xf32>, vector<14x8xf32> -> vector<14x8xf32>
      %cst_121 = arith.constant dense<0.000000e+00> : vector<14x8xf32>
      %221 = tpu.matmul %13, %219, %cst_121 {dimension_numbers = #tpu.dot_dimension_numbers<[1], [0], [0], [1], [0, 0, 1, 1], [], []>} : vector<14x28xf32>, vector<28x8xf32>, vector<14x8xf32> -> vector<14x8xf32>
      %222 = arith.maximumf %220, %221 : vector<14x8xf32>
      %c1_i32_122 = arith.constant 1 : i32
      %223 = arith.addi %arg11, %c1_i32_122 : i32
      %224 = arith.index_cast %223 : i32 to index
      %c1_123 = arith.constant 1 : index
      %c0_124 = arith.constant 0 : index
      %225 = vector.load %arg10[%224, %c1_123, %c0_124] : memref<16x16x8xf32, #tpu.memory_space<vmem>>, vector<1x14x8xf32>
      %226 = vector.shape_cast %225 : vector<1x14x8xf32> to vector<14x8xf32>
      %227 = vector.shape_cast %222 : vector<14x8xf32> to vector<1x14x8xf32>
      tpu.vector_store %arg10[%224, %c1_123, %c0_124], %227 {strides = array<i32>} : memref<16x16x8xf32, #tpu.memory_space<vmem>>, vector<1x14x8xf32>,
    }
    %c14_i32_21 = arith.constant 14 : i32
    %c0_22 = arith.constant 0 : index
    %c0_23 = arith.constant 0 : index
    %38 = vector.load %arg7[%c0_22, %c0_23] : memref<1x10xf32, #tpu.memory_space<vmem>>, vector<1x10xf32>
    %c0_i32_24 = arith.constant 0 : i32
    %c7_i32 = arith.constant 7 : i32
    %39 = arith.addi %c0_i32_24, %c7_i32 : i32
    %c1_i32_25 = arith.constant 1 : i32
    %40 = scf.for %arg11 = %c0_i32_24 to %39 step %c1_i32_25 iter_args(%arg12 = %38) -> (vector<1x10xf32>)  : i32 {
      %c2_i32_30 = arith.constant 2 : i32
      %44 = arith.muli %c2_i32_30, %arg11 : i32
      %cst_31 = arith.constant 0.000000e+00 : f32
      %45 = vector.broadcast %cst_31 : f32 to vector<14x16xf32>
      %46 = vector.broadcast %29 : vector<1x16xf32> to vector<14x16xf32>
      %47 = arith.addf %45, %46 : vector<14x16xf32>
      %c0_i32_32 = arith.constant 0 : i32
      %48 = arith.addi %44, %c0_i32_32 : i32
      %49 = arith.index_cast %48 : i32 to index
      %c0_33 = arith.constant 0 : index
      %c0_34 = arith.constant 0 : index
      %50 = vector.load %arg10[%49, %c0_33, %c0_34] : memref<16x16x8xf32, #tpu.memory_space<vmem>>, vector<1x14x8xf32>
      %51 = vector.shape_cast %50 : vector<1x14x8xf32> to vector<14x8xf32>
      %c0_35 = arith.constant 0 : index
      %c0_36 = arith.constant 0 : index
      %c0_37 = arith.constant 0 : index
      %52 = vector.load %arg4[%c0_35, %c0_36, %c0_37] : memref<9x8x16xf32, #tpu.memory_space<vmem>>, vector<1x8x16xf32>
      %53 = vector.shape_cast %52 : vector<1x8x16xf32> to vector<8x16xf32>
      %cst_38 = arith.constant dense<0.000000e+00> : vector<14x16xf32>
      %54 = tpu.matmul %51, %53, %cst_38 {dimension_numbers = #tpu.dot_dimension_numbers<[1], [0], [0], [1], [0, 0, 1, 1], [], []>} : vector<14x8xf32>, vector<8x16xf32>, vector<14x16xf32> -> vector<14x16xf32>
      %55 = arith.addf %47, %54 : vector<14x16xf32>
      %c0_i32_39 = arith.constant 0 : i32
      %56 = arith.addi %44, %c0_i32_39 : i32
      %57 = arith.index_cast %56 : i32 to index
      %c1_40 = arith.constant 1 : index
      %c0_41 = arith.constant 0 : index
      %58 = vector.load %arg10[%57, %c1_40, %c0_41] : memref<16x16x8xf32, #tpu.memory_space<vmem>>, vector<1x14x8xf32>
      %59 = vector.shape_cast %58 : vector<1x14x8xf32> to vector<14x8xf32>
      %c1_42 = arith.constant 1 : index
      %c0_43 = arith.constant 0 : index
      %c0_44 = arith.constant 0 : index
      %60 = vector.load %arg4[%c1_42, %c0_43, %c0_44] : memref<9x8x16xf32, #tpu.memory_space<vmem>>, vector<1x8x16xf32>
      %61 = vector.shape_cast %60 : vector<1x8x16xf32> to vector<8x16xf32>
      %cst_45 = arith.constant dense<0.000000e+00> : vector<14x16xf32>
      %62 = tpu.matmul %59, %61, %cst_45 {dimension_numbers = #tpu.dot_dimension_numbers<[1], [0], [0], [1], [0, 0, 1, 1], [], []>} : vector<14x8xf32>, vector<8x16xf32>, vector<14x16xf32> -> vector<14x16xf32>
      %63 = arith.addf %55, %62 : vector<14x16xf32>
      %c0_i32_46 = arith.constant 0 : i32
      %64 = arith.addi %44, %c0_i32_46 : i32
      %65 = arith.index_cast %64 : i32 to index
      %c2 = arith.constant 2 : index
      %c0_47 = arith.constant 0 : index
      %66 = vector.load %arg10[%65, %c2, %c0_47] : memref<16x16x8xf32, #tpu.memory_space<vmem>>, vector<1x14x8xf32>
      %67 = vector.shape_cast %66 : vector<1x14x8xf32> to vector<14x8xf32>
      %c2_48 = arith.constant 2 : index
      %c0_49 = arith.constant 0 : index
      %c0_50 = arith.constant 0 : index
      %68 = vector.load %arg4[%c2_48, %c0_49, %c0_50] : memref<9x8x16xf32, #tpu.memory_space<vmem>>, vector<1x8x16xf32>
      %69 = vector.shape_cast %68 : vector<1x8x16xf32> to vector<8x16xf32>
      %cst_51 = arith.constant dense<0.000000e+00> : vector<14x16xf32>
      %70 = tpu.matmul %67, %69, %cst_51 {dimension_numbers = #tpu.dot_dimension_numbers<[1], [0], [0], [1], [0, 0, 1, 1], [], []>} : vector<14x8xf32>, vector<8x16xf32>, vector<14x16xf32> -> vector<14x16xf32>
      %71 = arith.addf %63, %70 : vector<14x16xf32>
      %c1_i32_52 = arith.constant 1 : i32
      %72 = arith.addi %44, %c1_i32_52 : i32
      %73 = arith.index_cast %72 : i32 to index
      %c0_53 = arith.constant 0 : index
      %c0_54 = arith.constant 0 : index
      %74 = vector.load %arg10[%73, %c0_53, %c0_54] : memref<16x16x8xf32, #tpu.memory_space<vmem>>, vector<1x14x8xf32>
      %75 = vector.shape_cast %74 : vector<1x14x8xf32> to vector<14x8xf32>
      %c3 = arith.constant 3 : index
      %c0_55 = arith.constant 0 : index
      %c0_56 = arith.constant 0 : index
      %76 = vector.load %arg4[%c3, %c0_55, %c0_56] : memref<9x8x16xf32, #tpu.memory_space<vmem>>, vector<1x8x16xf32>
      %77 = vector.shape_cast %76 : vector<1x8x16xf32> to vector<8x16xf32>
      %cst_57 = arith.constant dense<0.000000e+00> : vector<14x16xf32>
      %78 = tpu.matmul %75, %77, %cst_57 {dimension_numbers = #tpu.dot_dimension_numbers<[1], [0], [0], [1], [0, 0, 1, 1], [], []>} : vector<14x8xf32>, vector<8x16xf32>, vector<14x16xf32> -> vector<14x16xf32>
      %79 = arith.addf %71, %78 : vector<14x16xf32>
      %c1_i32_58 = arith.constant 1 : i32
      %80 = arith.addi %44, %c1_i32_58 : i32
      %81 = arith.index_cast %80 : i32 to index
      %c1_59 = arith.constant 1 : index
      %c0_60 = arith.constant 0 : index
      %82 = vector.load %arg10[%81, %c1_59, %c0_60] : memref<16x16x8xf32, #tpu.memory_space<vmem>>, vector<1x14x8xf32>
      %83 = vector.shape_cast %82 : vector<1x14x8xf32> to vector<14x8xf32>
      %c4 = arith.constant 4 : index
      %c0_61 = arith.constant 0 : index
      %c0_62 = arith.constant 0 : index
      %84 = vector.load %arg4[%c4, %c0_61, %c0_62] : memref<9x8x16xf32, #tpu.memory_space<vmem>>, vector<1x8x16xf32>
      %85 = vector.shape_cast %84 : vector<1x8x16xf32> to vector<8x16xf32>
      %cst_63 = arith.constant dense<0.000000e+00> : vector<14x16xf32>
      %86 = tpu.matmul %83, %85, %cst_63 {dimension_numbers = #tpu.dot_dimension_numbers<[1], [0], [0], [1], [0, 0, 1, 1], [], []>} : vector<14x8xf32>, vector<8x16xf32>, vector<14x16xf32> -> vector<14x16xf32>
      %87 = arith.addf %79, %86 : vector<14x16xf32>
      %c1_i32_64 = arith.constant 1 : i32
      %88 = arith.addi %44, %c1_i32_64 : i32
      %89 = arith.index_cast %88 : i32 to index
      %c2_65 = arith.constant 2 : index
      %c0_66 = arith.constant 0 : index
      %90 = vector.load %arg10[%89, %c2_65, %c0_66] : memref<16x16x8xf32, #tpu.memory_space<vmem>>, vector<1x14x8xf32>
      %91 = vector.shape_cast %90 : vector<1x14x8xf32> to vector<14x8xf32>
      %c5 = arith.constant 5 : index
      %c0_67 = arith.constant 0 : index
      %c0_68 = arith.constant 0 : index
      %92 = vector.load %arg4[%c5, %c0_67, %c0_68] : memref<9x8x16xf32, #tpu.memory_space<vmem>>, vector<1x8x16xf32>
      %93 = vector.shape_cast %92 : vector<1x8x16xf32> to vector<8x16xf32>
      %cst_69 = arith.constant dense<0.000000e+00> : vector<14x16xf32>
      %94 = tpu.matmul %91, %93, %cst_69 {dimension_numbers = #tpu.dot_dimension_numbers<[1], [0], [0], [1], [0, 0, 1, 1], [], []>} : vector<14x8xf32>, vector<8x16xf32>, vector<14x16xf32> -> vector<14x16xf32>
      %95 = arith.addf %87, %94 : vector<14x16xf32>
      %c2_i32_70 = arith.constant 2 : i32
      %96 = arith.addi %44, %c2_i32_70 : i32
      %97 = arith.index_cast %96 : i32 to index
      %c0_71 = arith.constant 0 : index
      %c0_72 = arith.constant 0 : index
      %98 = vector.load %arg10[%97, %c0_71, %c0_72] : memref<16x16x8xf32, #tpu.memory_space<vmem>>, vector<1x14x8xf32>
      %99 = vector.shape_cast %98 : vector<1x14x8xf32> to vector<14x8xf32>
      %c6 = arith.constant 6 : index
      %c0_73 = arith.constant 0 : index
      %c0_74 = arith.constant 0 : index
      %100 = vector.load %arg4[%c6, %c0_73, %c0_74] : memref<9x8x16xf32, #tpu.memory_space<vmem>>, vector<1x8x16xf32>
      %101 = vector.shape_cast %100 : vector<1x8x16xf32> to vector<8x16xf32>
      %cst_75 = arith.constant dense<0.000000e+00> : vector<14x16xf32>
      %102 = tpu.matmul %99, %101, %cst_75 {dimension_numbers = #tpu.dot_dimension_numbers<[1], [0], [0], [1], [0, 0, 1, 1], [], []>} : vector<14x8xf32>, vector<8x16xf32>, vector<14x16xf32> -> vector<14x16xf32>
      %103 = arith.addf %95, %102 : vector<14x16xf32>
      %c2_i32_76 = arith.constant 2 : i32
      %104 = arith.addi %44, %c2_i32_76 : i32
      %105 = arith.index_cast %104 : i32 to index
      %c1_77 = arith.constant 1 : index
      %c0_78 = arith.constant 0 : index
      %106 = vector.load %arg10[%105, %c1_77, %c0_78] : memref<16x16x8xf32, #tpu.memory_space<vmem>>, vector<1x14x8xf32>
      %107 = vector.shape_cast %106 : vector<1x14x8xf32> to vector<14x8xf32>
      %c7 = arith.constant 7 : index
      %c0_79 = arith.constant 0 : index
      %c0_80 = arith.constant 0 : index
      %108 = vector.load %arg4[%c7, %c0_79, %c0_80] : memref<9x8x16xf32, #tpu.memory_space<vmem>>, vector<1x8x16xf32>
      %109 = vector.shape_cast %108 : vector<1x8x16xf32> to vector<8x16xf32>
      %cst_81 = arith.constant dense<0.000000e+00> : vector<14x16xf32>
      %110 = tpu.matmul %107, %109, %cst_81 {dimension_numbers = #tpu.dot_dimension_numbers<[1], [0], [0], [1], [0, 0, 1, 1], [], []>} : vector<14x8xf32>, vector<8x16xf32>, vector<14x16xf32> -> vector<14x16xf32>
      %111 = arith.addf %103, %110 : vector<14x16xf32>
      %c2_i32_82 = arith.constant 2 : i32
      %112 = arith.addi %44, %c2_i32_82 : i32
      %113 = arith.index_cast %112 : i32 to index
      %c2_83 = arith.constant 2 : index
      %c0_84 = arith.constant 0 : index
      %114 = vector.load %arg10[%113, %c2_83, %c0_84] : memref<16x16x8xf32, #tpu.memory_space<vmem>>, vector<1x14x8xf32>
      %115 = vector.shape_cast %114 : vector<1x14x8xf32> to vector<14x8xf32>
      %c8 = arith.constant 8 : index
      %c0_85 = arith.constant 0 : index
      %c0_86 = arith.constant 0 : index
      %116 = vector.load %arg4[%c8, %c0_85, %c0_86] : memref<9x8x16xf32, #tpu.memory_space<vmem>>, vector<1x8x16xf32>
      %117 = vector.shape_cast %116 : vector<1x8x16xf32> to vector<8x16xf32>
      %cst_87 = arith.constant dense<0.000000e+00> : vector<14x16xf32>
      %118 = tpu.matmul %115, %117, %cst_87 {dimension_numbers = #tpu.dot_dimension_numbers<[1], [0], [0], [1], [0, 0, 1, 1], [], []>} : vector<14x8xf32>, vector<8x16xf32>, vector<14x16xf32> -> vector<14x16xf32>
      %119 = arith.addf %111, %118 : vector<14x16xf32>
      %cst_88 = arith.constant 0.000000e+00 : f32
      %120 = vector.broadcast %cst_88 : f32 to vector<14x16xf32>
      %121 = arith.maximumf %119, %120 : vector<14x16xf32>
      %c2_i32_89 = arith.constant 2 : i32
      %122 = arith.muli %c2_i32_89, %arg11 : i32
      %c1_i32_90 = arith.constant 1 : i32
      %123 = arith.addi %122, %c1_i32_90 : i32
      %cst_91 = arith.constant 0.000000e+00 : f32
      %124 = vector.broadcast %cst_91 : f32 to vector<14x16xf32>
      %125 = vector.broadcast %29 : vector<1x16xf32> to vector<14x16xf32>
      %126 = arith.addf %124, %125 : vector<14x16xf32>
      %c0_i32_92 = arith.constant 0 : i32
      %127 = arith.addi %123, %c0_i32_92 : i32
      %128 = arith.index_cast %127 : i32 to index
      %c0_93 = arith.constant 0 : index
      %c0_94 = arith.constant 0 : index
      %129 = vector.load %arg10[%128, %c0_93, %c0_94] : memref<16x16x8xf32, #tpu.memory_space<vmem>>, vector<1x14x8xf32>
      %130 = vector.shape_cast %129 : vector<1x14x8xf32> to vector<14x8xf32>
      %c0_95 = arith.constant 0 : index
      %c0_96 = arith.constant 0 : index
      %c0_97 = arith.constant 0 : index
      %131 = vector.load %arg4[%c0_95, %c0_96, %c0_97] : memref<9x8x16xf32, #tpu.memory_space<vmem>>, vector<1x8x16xf32>
      %132 = vector.shape_cast %131 : vector<1x8x16xf32> to vector<8x16xf32>
      %cst_98 = arith.constant dense<0.000000e+00> : vector<14x16xf32>
      %133 = tpu.matmul %130, %132, %cst_98 {dimension_numbers = #tpu.dot_dimension_numbers<[1], [0], [0], [1], [0, 0, 1, 1], [], []>} : vector<14x8xf32>, vector<8x16xf32>, vector<14x16xf32> -> vector<14x16xf32>
      %134 = arith.addf %126, %133 : vector<14x16xf32>
      %c0_i32_99 = arith.constant 0 : i32
      %135 = arith.addi %123, %c0_i32_99 : i32
      %136 = arith.index_cast %135 : i32 to index
      %c1_100 = arith.constant 1 : index
      %c0_101 = arith.constant 0 : index
      %137 = vector.load %arg10[%136, %c1_100, %c0_101] : memref<16x16x8xf32, #tpu.memory_space<vmem>>, vector<1x14x8xf32>
      %138 = vector.shape_cast %137 : vector<1x14x8xf32> to vector<14x8xf32>
      %c1_102 = arith.constant 1 : index
      %c0_103 = arith.constant 0 : index
      %c0_104 = arith.constant 0 : index
      %139 = vector.load %arg4[%c1_102, %c0_103, %c0_104] : memref<9x8x16xf32, #tpu.memory_space<vmem>>, vector<1x8x16xf32>
      %140 = vector.shape_cast %139 : vector<1x8x16xf32> to vector<8x16xf32>
      %cst_105 = arith.constant dense<0.000000e+00> : vector<14x16xf32>
      %141 = tpu.matmul %138, %140, %cst_105 {dimension_numbers = #tpu.dot_dimension_numbers<[1], [0], [0], [1], [0, 0, 1, 1], [], []>} : vector<14x8xf32>, vector<8x16xf32>, vector<14x16xf32> -> vector<14x16xf32>
      %142 = arith.addf %134, %141 : vector<14x16xf32>
      %c0_i32_106 = arith.constant 0 : i32
      %143 = arith.addi %123, %c0_i32_106 : i32
      %144 = arith.index_cast %143 : i32 to index
      %c2_107 = arith.constant 2 : index
      %c0_108 = arith.constant 0 : index
      %145 = vector.load %arg10[%144, %c2_107, %c0_108] : memref<16x16x8xf32, #tpu.memory_space<vmem>>, vector<1x14x8xf32>
      %146 = vector.shape_cast %145 : vector<1x14x8xf32> to vector<14x8xf32>
      %c2_109 = arith.constant 2 : index
      %c0_110 = arith.constant 0 : index
      %c0_111 = arith.constant 0 : index
      %147 = vector.load %arg4[%c2_109, %c0_110, %c0_111] : memref<9x8x16xf32, #tpu.memory_space<vmem>>, vector<1x8x16xf32>
      %148 = vector.shape_cast %147 : vector<1x8x16xf32> to vector<8x16xf32>
      %cst_112 = arith.constant dense<0.000000e+00> : vector<14x16xf32>
      %149 = tpu.matmul %146, %148, %cst_112 {dimension_numbers = #tpu.dot_dimension_numbers<[1], [0], [0], [1], [0, 0, 1, 1], [], []>} : vector<14x8xf32>, vector<8x16xf32>, vector<14x16xf32> -> vector<14x16xf32>
      %150 = arith.addf %142, %149 : vector<14x16xf32>
      %c1_i32_113 = arith.constant 1 : i32
      %151 = arith.addi %123, %c1_i32_113 : i32
      %152 = arith.index_cast %151 : i32 to index
      %c0_114 = arith.constant 0 : index
      %c0_115 = arith.constant 0 : index
      %153 = vector.load %arg10[%152, %c0_114, %c0_115] : memref<16x16x8xf32, #tpu.memory_space<vmem>>, vector<1x14x8xf32>
      %154 = vector.shape_cast %153 : vector<1x14x8xf32> to vector<14x8xf32>
      %c3_116 = arith.constant 3 : index
      %c0_117 = arith.constant 0 : index
      %c0_118 = arith.constant 0 : index
      %155 = vector.load %arg4[%c3_116, %c0_117, %c0_118] : memref<9x8x16xf32, #tpu.memory_space<vmem>>, vector<1x8x16xf32>
      %156 = vector.shape_cast %155 : vector<1x8x16xf32> to vector<8x16xf32>
      %cst_119 = arith.constant dense<0.000000e+00> : vector<14x16xf32>
      %157 = tpu.matmul %154, %156, %cst_119 {dimension_numbers = #tpu.dot_dimension_numbers<[1], [0], [0], [1], [0, 0, 1, 1], [], []>} : vector<14x8xf32>, vector<8x16xf32>, vector<14x16xf32> -> vector<14x16xf32>
      %158 = arith.addf %150, %157 : vector<14x16xf32>
      %c1_i32_120 = arith.constant 1 : i32
      %159 = arith.addi %123, %c1_i32_120 : i32
      %160 = arith.index_cast %159 : i32 to index
      %c1_121 = arith.constant 1 : index
      %c0_122 = arith.constant 0 : index
      %161 = vector.load %arg10[%160, %c1_121, %c0_122] : memref<16x16x8xf32, #tpu.memory_space<vmem>>, vector<1x14x8xf32>
      %162 = vector.shape_cast %161 : vector<1x14x8xf32> to vector<14x8xf32>
      %c4_123 = arith.constant 4 : index
      %c0_124 = arith.constant 0 : index
      %c0_125 = arith.constant 0 : index
      %163 = vector.load %arg4[%c4_123, %c0_124, %c0_125] : memref<9x8x16xf32, #tpu.memory_space<vmem>>, vector<1x8x16xf32>
      %164 = vector.shape_cast %163 : vector<1x8x16xf32> to vector<8x16xf32>
      %cst_126 = arith.constant dense<0.000000e+00> : vector<14x16xf32>
      %165 = tpu.matmul %162, %164, %cst_126 {dimension_numbers = #tpu.dot_dimension_numbers<[1], [0], [0], [1], [0, 0, 1, 1], [], []>} : vector<14x8xf32>, vector<8x16xf32>, vector<14x16xf32> -> vector<14x16xf32>
      %166 = arith.addf %158, %165 : vector<14x16xf32>
      %c1_i32_127 = arith.constant 1 : i32
      %167 = arith.addi %123, %c1_i32_127 : i32
      %168 = arith.index_cast %167 : i32 to index
      %c2_128 = arith.constant 2 : index
      %c0_129 = arith.constant 0 : index
      %169 = vector.load %arg10[%168, %c2_128, %c0_129] : memref<16x16x8xf32, #tpu.memory_space<vmem>>, vector<1x14x8xf32>
      %170 = vector.shape_cast %169 : vector<1x14x8xf32> to vector<14x8xf32>
      %c5_130 = arith.constant 5 : index
      %c0_131 = arith.constant 0 : index
      %c0_132 = arith.constant 0 : index
      %171 = vector.load %arg4[%c5_130, %c0_131, %c0_132] : memref<9x8x16xf32, #tpu.memory_space<vmem>>, vector<1x8x16xf32>
      %172 = vector.shape_cast %171 : vector<1x8x16xf32> to vector<8x16xf32>
      %cst_133 = arith.constant dense<0.000000e+00> : vector<14x16xf32>
      %173 = tpu.matmul %170, %172, %cst_133 {dimension_numbers = #tpu.dot_dimension_numbers<[1], [0], [0], [1], [0, 0, 1, 1], [], []>} : vector<14x8xf32>, vector<8x16xf32>, vector<14x16xf32> -> vector<14x16xf32>
      %174 = arith.addf %166, %173 : vector<14x16xf32>
      %c2_i32_134 = arith.constant 2 : i32
      %175 = arith.addi %123, %c2_i32_134 : i32
      %176 = arith.index_cast %175 : i32 to index
      %c0_135 = arith.constant 0 : index
      %c0_136 = arith.constant 0 : index
      %177 = vector.load %arg10[%176, %c0_135, %c0_136] : memref<16x16x8xf32, #tpu.memory_space<vmem>>, vector<1x14x8xf32>
      %178 = vector.shape_cast %177 : vector<1x14x8xf32> to vector<14x8xf32>
      %c6_137 = arith.constant 6 : index
      %c0_138 = arith.constant 0 : index
      %c0_139 = arith.constant 0 : index
      %179 = vector.load %arg4[%c6_137, %c0_138, %c0_139] : memref<9x8x16xf32, #tpu.memory_space<vmem>>, vector<1x8x16xf32>
      %180 = vector.shape_cast %179 : vector<1x8x16xf32> to vector<8x16xf32>
      %cst_140 = arith.constant dense<0.000000e+00> : vector<14x16xf32>
      %181 = tpu.matmul %178, %180, %cst_140 {dimension_numbers = #tpu.dot_dimension_numbers<[1], [0], [0], [1], [0, 0, 1, 1], [], []>} : vector<14x8xf32>, vector<8x16xf32>, vector<14x16xf32> -> vector<14x16xf32>
      %182 = arith.addf %174, %181 : vector<14x16xf32>
      %c2_i32_141 = arith.constant 2 : i32
      %183 = arith.addi %123, %c2_i32_141 : i32
      %184 = arith.index_cast %183 : i32 to index
      %c1_142 = arith.constant 1 : index
      %c0_143 = arith.constant 0 : index
      %185 = vector.load %arg10[%184, %c1_142, %c0_143] : memref<16x16x8xf32, #tpu.memory_space<vmem>>, vector<1x14x8xf32>
      %186 = vector.shape_cast %185 : vector<1x14x8xf32> to vector<14x8xf32>
      %c7_144 = arith.constant 7 : index
      %c0_145 = arith.constant 0 : index
      %c0_146 = arith.constant 0 : index
      %187 = vector.load %arg4[%c7_144, %c0_145, %c0_146] : memref<9x8x16xf32, #tpu.memory_space<vmem>>, vector<1x8x16xf32>
      %188 = vector.shape_cast %187 : vector<1x8x16xf32> to vector<8x16xf32>
      %cst_147 = arith.constant dense<0.000000e+00> : vector<14x16xf32>
      %189 = tpu.matmul %186, %188, %cst_147 {dimension_numbers = #tpu.dot_dimension_numbers<[1], [0], [0], [1], [0, 0, 1, 1], [], []>} : vector<14x8xf32>, vector<8x16xf32>, vector<14x16xf32> -> vector<14x16xf32>
      %190 = arith.addf %182, %189 : vector<14x16xf32>
      %c2_i32_148 = arith.constant 2 : i32
      %191 = arith.addi %123, %c2_i32_148 : i32
      %192 = arith.index_cast %191 : i32 to index
      %c2_149 = arith.constant 2 : index
      %c0_150 = arith.constant 0 : index
      %193 = vector.load %arg10[%192, %c2_149, %c0_150] : memref<16x16x8xf32, #tpu.memory_space<vmem>>, vector<1x14x8xf32>
      %194 = vector.shape_cast %193 : vector<1x14x8xf32> to vector<14x8xf32>
      %c8_151 = arith.constant 8 : index
      %c0_152 = arith.constant 0 : index
      %c0_153 = arith.constant 0 : index
      %195 = vector.load %arg4[%c8_151, %c0_152, %c0_153] : memref<9x8x16xf32, #tpu.memory_space<vmem>>, vector<1x8x16xf32>
      %196 = vector.shape_cast %195 : vector<1x8x16xf32> to vector<8x16xf32>
      %cst_154 = arith.constant dense<0.000000e+00> : vector<14x16xf32>
      %197 = tpu.matmul %194, %196, %cst_154 {dimension_numbers = #tpu.dot_dimension_numbers<[1], [0], [0], [1], [0, 0, 1, 1], [], []>} : vector<14x8xf32>, vector<8x16xf32>, vector<14x16xf32> -> vector<14x16xf32>
      %198 = arith.addf %190, %197 : vector<14x16xf32>
      %cst_155 = arith.constant 0.000000e+00 : f32
      %199 = vector.broadcast %cst_155 : f32 to vector<14x16xf32>
      %200 = arith.maximumf %198, %199 : vector<14x16xf32>
      %201 = arith.maximumf %121, %200 : vector<14x16xf32>
      %cst_156 = arith.constant dense<0.000000e+00> : vector<7x16xf32>
      %202 = tpu.matmul %20, %201, %cst_156 {dimension_numbers = #tpu.dot_dimension_numbers<[1], [0], [0], [1], [0, 0, 1, 1], [], []>} : vector<7x14xf32>, vector<14x16xf32>, vector<7x16xf32> -> vector<7x16xf32>
      %cst_157 = arith.constant dense<0.000000e+00> : vector<7x16xf32>
      %203 = tpu.matmul %27, %201, %cst_157 {dimension_numbers = #tpu.dot_dimension_numbers<[1], [0], [0], [1], [0, 0, 1, 1], [], []>} : vector<7x14xf32>, vector<14x16xf32>, vector<7x16xf32> -> vector<7x16xf32>
      %204 = arith.maximumf %202, %203 : vector<7x16xf32>
      %205 = vector.extract_strided_slice %204 {offsets = [0, 0], sizes = [1, 16], strides = [1, 1]} : vector<7x16xf32> to vector<1x16xf32>
      %c7_i32_158 = arith.constant 7 : i32
      %206 = arith.muli %arg11, %c7_i32_158 : i32
      %c0_i32_159 = arith.constant 0 : i32
      %207 = arith.addi %206, %c0_i32_159 : i32
      %208 = arith.index_cast %207 : i32 to index
      %c0_160 = arith.constant 0 : index
      %c0_161 = arith.constant 0 : index
      %209 = vector.load %arg6[%208, %c0_160, %c0_161] : memref<49x16x10xf32, #tpu.memory_space<vmem>>, vector<1x16x10xf32>
      %210 = vector.shape_cast %209 : vector<1x16x10xf32> to vector<16x10xf32>
      %cst_162 = arith.constant dense<0.000000e+00> : vector<1x10xf32>
      %211 = tpu.matmul %205, %210, %cst_162 {dimension_numbers = #tpu.dot_dimension_numbers<[1], [0], [0], [1], [0, 0, 1, 1], [], []>} : vector<1x16xf32>, vector<16x10xf32>, vector<1x10xf32> -> vector<1x10xf32>
      %212 = arith.addf %arg12, %211 : vector<1x10xf32>
      %213 = vector.extract_strided_slice %204 {offsets = [1, 0], sizes = [1, 16], strides = [1, 1]} : vector<7x16xf32> to vector<1x16xf32>
      %c7_i32_163 = arith.constant 7 : i32
      %214 = arith.muli %arg11, %c7_i32_163 : i32
      %c1_i32_164 = arith.constant 1 : i32
      %215 = arith.addi %214, %c1_i32_164 : i32
      %216 = arith.index_cast %215 : i32 to index
      %c0_165 = arith.constant 0 : index
      %c0_166 = arith.constant 0 : index
      %217 = vector.load %arg6[%216, %c0_165, %c0_166] : memref<49x16x10xf32, #tpu.memory_space<vmem>>, vector<1x16x10xf32>
      %218 = vector.shape_cast %217 : vector<1x16x10xf32> to vector<16x10xf32>
      %cst_167 = arith.constant dense<0.000000e+00> : vector<1x10xf32>
      %219 = tpu.matmul %213, %218, %cst_167 {dimension_numbers = #tpu.dot_dimension_numbers<[1], [0], [0], [1], [0, 0, 1, 1], [], []>} : vector<1x16xf32>, vector<16x10xf32>, vector<1x10xf32> -> vector<1x10xf32>
      %220 = arith.addf %212, %219 : vector<1x10xf32>
      %221 = vector.extract_strided_slice %204 {offsets = [2, 0], sizes = [1, 16], strides = [1, 1]} : vector<7x16xf32> to vector<1x16xf32>
      %c7_i32_168 = arith.constant 7 : i32
      %222 = arith.muli %arg11, %c7_i32_168 : i32
      %c2_i32_169 = arith.constant 2 : i32
      %223 = arith.addi %222, %c2_i32_169 : i32
      %224 = arith.index_cast %223 : i32 to index
      %c0_170 = arith.constant 0 : index
      %c0_171 = arith.constant 0 : index
      %225 = vector.load %arg6[%224, %c0_170, %c0_171] : memref<49x16x10xf32, #tpu.memory_space<vmem>>, vector<1x16x10xf32>
      %226 = vector.shape_cast %225 : vector<1x16x10xf32> to vector<16x10xf32>
      %cst_172 = arith.constant dense<0.000000e+00> : vector<1x10xf32>
      %227 = tpu.matmul %221, %226, %cst_172 {dimension_numbers = #tpu.dot_dimension_numbers<[1], [0], [0], [1], [0, 0, 1, 1], [], []>} : vector<1x16xf32>, vector<16x10xf32>, vector<1x10xf32> -> vector<1x10xf32>
      %228 = arith.addf %220, %227 : vector<1x10xf32>
      %229 = vector.extract_strided_slice %204 {offsets = [3, 0], sizes = [1, 16], strides = [1, 1]} : vector<7x16xf32> to vector<1x16xf32>
      %c7_i32_173 = arith.constant 7 : i32
      %230 = arith.muli %arg11, %c7_i32_173 : i32
      %c3_i32 = arith.constant 3 : i32
      %231 = arith.addi %230, %c3_i32 : i32
      %232 = arith.index_cast %231 : i32 to index
      %c0_174 = arith.constant 0 : index
      %c0_175 = arith.constant 0 : index
      %233 = vector.load %arg6[%232, %c0_174, %c0_175] : memref<49x16x10xf32, #tpu.memory_space<vmem>>, vector<1x16x10xf32>
      %234 = vector.shape_cast %233 : vector<1x16x10xf32> to vector<16x10xf32>
      %cst_176 = arith.constant dense<0.000000e+00> : vector<1x10xf32>
      %235 = tpu.matmul %229, %234, %cst_176 {dimension_numbers = #tpu.dot_dimension_numbers<[1], [0], [0], [1], [0, 0, 1, 1], [], []>} : vector<1x16xf32>, vector<16x10xf32>, vector<1x10xf32> -> vector<1x10xf32>
      %236 = arith.addf %228, %235 : vector<1x10xf32>
      %237 = vector.extract_strided_slice %204 {offsets = [4, 0], sizes = [1, 16], strides = [1, 1]} : vector<7x16xf32> to vector<1x16xf32>
      %c7_i32_177 = arith.constant 7 : i32
      %238 = arith.muli %arg11, %c7_i32_177 : i32
      %c4_i32 = arith.constant 4 : i32
      %239 = arith.addi %238, %c4_i32 : i32
      %240 = arith.index_cast %239 : i32 to index
      %c0_178 = arith.constant 0 : index
      %c0_179 = arith.constant 0 : index
      %241 = vector.load %arg6[%240, %c0_178, %c0_179] : memref<49x16x10xf32, #tpu.memory_space<vmem>>, vector<1x16x10xf32>
      %242 = vector.shape_cast %241 : vector<1x16x10xf32> to vector<16x10xf32>
      %cst_180 = arith.constant dense<0.000000e+00> : vector<1x10xf32>
      %243 = tpu.matmul %237, %242, %cst_180 {dimension_numbers = #tpu.dot_dimension_numbers<[1], [0], [0], [1], [0, 0, 1, 1], [], []>} : vector<1x16xf32>, vector<16x10xf32>, vector<1x10xf32> -> vector<1x10xf32>
      %244 = arith.addf %236, %243 : vector<1x10xf32>
      %245 = vector.extract_strided_slice %204 {offsets = [5, 0], sizes = [1, 16], strides = [1, 1]} : vector<7x16xf32> to vector<1x16xf32>
      %c7_i32_181 = arith.constant 7 : i32
      %246 = arith.muli %arg11, %c7_i32_181 : i32
      %c5_i32 = arith.constant 5 : i32
      %247 = arith.addi %246, %c5_i32 : i32
      %248 = arith.index_cast %247 : i32 to index
      %c0_182 = arith.constant 0 : index
      %c0_183 = arith.constant 0 : index
      %249 = vector.load %arg6[%248, %c0_182, %c0_183] : memref<49x16x10xf32, #tpu.memory_space<vmem>>, vector<1x16x10xf32>
      %250 = vector.shape_cast %249 : vector<1x16x10xf32> to vector<16x10xf32>
      %cst_184 = arith.constant dense<0.000000e+00> : vector<1x10xf32>
      %251 = tpu.matmul %245, %250, %cst_184 {dimension_numbers = #tpu.dot_dimension_numbers<[1], [0], [0], [1], [0, 0, 1, 1], [], []>} : vector<1x16xf32>, vector<16x10xf32>, vector<1x10xf32> -> vector<1x10xf32>
      %252 = arith.addf %244, %251 : vector<1x10xf32>
      %253 = vector.extract_strided_slice %204 {offsets = [6, 0], sizes = [1, 16], strides = [1, 1]} : vector<7x16xf32> to vector<1x16xf32>
      %c7_i32_185 = arith.constant 7 : i32
      %254 = arith.muli %arg11, %c7_i32_185 : i32
      %c6_i32 = arith.constant 6 : i32
      %255 = arith.addi %254, %c6_i32 : i32
      %256 = arith.index_cast %255 : i32 to index
      %c0_186 = arith.constant 0 : index
      %c0_187 = arith.constant 0 : index
      %257 = vector.load %arg6[%256, %c0_186, %c0_187] : memref<49x16x10xf32, #tpu.memory_space<vmem>>, vector<1x16x10xf32>
      %258 = vector.shape_cast %257 : vector<1x16x10xf32> to vector<16x10xf32>
      %cst_188 = arith.constant dense<0.000000e+00> : vector<1x10xf32>
      %259 = tpu.matmul %253, %258, %cst_188 {dimension_numbers = #tpu.dot_dimension_numbers<[1], [0], [0], [1], [0, 0, 1, 1], [], []>} : vector<1x16xf32>, vector<16x10xf32>, vector<1x10xf32> -> vector<1x10xf32>
      %260 = arith.addf %252, %259 : vector<1x10xf32>
      scf.yield %260 : vector<1x10xf32>
    }
    %c7_i32_26 = arith.constant 7 : i32
    %c0_27 = arith.constant 0 : index
    %c0_28 = arith.constant 0 : index
    %c0_29 = arith.constant 0 : index
    %41 = vector.load %arg8[%c0_27, %c0_28, %c0_29] : memref<1x1x10xf32, #tpu.memory_space<vmem>>, vector<1x1x10xf32>
    %42 = vector.shape_cast %41 : vector<1x1x10xf32> to vector<1x10xf32>
    %43 = vector.shape_cast %40 : vector<1x10xf32> to vector<1x1x10xf32>
    tpu.vector_store %arg8[%c0_27, %c0_28, %c0_29], %43 {strides = array<i32>} : memref<1x1x10xf32, #tpu.memory_space<vmem>>, vector<1x1x10xf32>,
    return
  }
  func.func @transform_0(%arg0: i32) -> (i32, i32, i32, i32) {
    %c0_i32 = arith.constant 0 : i32
    %c0_i32_0 = arith.constant 0 : i32
    %c0_i32_1 = arith.constant 0 : i32
    %c0_i32_2 = arith.constant 0 : i32
    return %arg0, %c0_i32, %c0_i32_0, %c0_i32_1 : i32, i32, i32, i32
  }
  func.func @transform_1(%arg0: i32) -> (i32, i32) {
    %c0_i32 = arith.constant 0 : i32
    %c0_i32_0 = arith.constant 0 : i32
    %c0_i32_1 = arith.constant 0 : i32
    return %c0_i32, %c0_i32_0 : i32, i32
  }
  func.func @transform_2(%arg0: i32) -> (i32, i32) {
    %c0_i32 = arith.constant 0 : i32
    %c0_i32_0 = arith.constant 0 : i32
    %c0_i32_1 = arith.constant 0 : i32
    return %c0_i32, %c0_i32_0 : i32, i32
  }
  func.func @transform_3(%arg0: i32) -> (i32, i32, i32) {
    %c0_i32 = arith.constant 0 : i32
    %c0_i32_0 = arith.constant 0 : i32
    %c0_i32_1 = arith.constant 0 : i32
    %c0_i32_2 = arith.constant 0 : i32
    return %c0_i32, %c0_i32_0, %c0_i32_1 : i32, i32, i32
  }
  func.func @transform_4(%arg0: i32) -> (i32, i32) {
    %c0_i32 = arith.constant 0 : i32
    %c0_i32_0 = arith.constant 0 : i32
    %c0_i32_1 = arith.constant 0 : i32
    return %c0_i32, %c0_i32_0 : i32, i32
  }
  func.func @transform_5(%arg0: i32) -> (i32, i32, i32) {
    %c0_i32 = arith.constant 0 : i32
    %c0_i32_0 = arith.constant 0 : i32
    %c0_i32_1 = arith.constant 0 : i32
    %c0_i32_2 = arith.constant 0 : i32
    return %c0_i32, %c0_i32_0, %c0_i32_1 : i32, i32, i32
  }
  func.func @transform_6(%arg0: i32) -> (i32, i32) {
    %c0_i32 = arith.constant 0 : i32
    %c0_i32_0 = arith.constant 0 : i32
    %c0_i32_1 = arith.constant 0 : i32
    return %c0_i32, %c0_i32_0 : i32, i32
  }
  func.func @transform_7(%arg0: i32) -> (i32, i32, i32) {
    %c0_i32 = arith.constant 0 : i32
    %c0_i32_0 = arith.constant 0 : i32
    %c0_i32_1 = arith.constant 0 : i32
    return %arg0, %c0_i32, %c0_i32_0 : i32, i32, i32
  }
}

</mosaic_0001>

<bundles_post_ra>
// kernel: simple_cnn_forward.1
= control target key start
LH: loop header
LB: loop body
LE: loop exit
PB: predicated region body
PF: predicated region fallthrough
CT: control target
= control target key end

     0   :  { %12 = vsyncpa [#allocation5], 0  ;;  %s5529_s0 = inlined_call_operand.vmem [shape: f32[2,28,28,1], index: 0, kind: input, shape index: {}]   ;;  %s5530_s1 = inlined_call_operand.vmem [shape: f32[9,8], index: 1, kind: input, shape index: {}]   ;;  %s5531_s2 = inlined_call_operand.vmem [shape: f32[1,8], index: 2, kind: input, shape index: {}]   ;;  %s5532_s3 = inlined_call_operand.vmem [shape: f32[9,8,16], index: 3, kind: input, shape index: {}]   ;;  %s5533_s4 = inlined_call_operand.vmem [shape: f32[1,16], index: 4, kind: input, shape index: {}]   ;;  %s5534_s5 = inlined_call_operand.vmem [shape: f32[49,16,10], index: 5, kind: input, shape index: {}]   ;;  %s5535_s6 = inlined_call_operand.vmem [shape: f32[1,10], index: 6, kind: input, shape index: {}]   ;;  %s5536_s7 = inlined_call_operand.hbm [shape: f32[2,1,10], index: 7, kind: output, shape index: {}]  }
   0x1   :  { %14 = vsyncpa [#allocation5 + $0x1], 0  ;;  %s4400_s24 = smov 0   ;;  %s4402_s25 = smov 0  }
   0x2   :  { %s4404_s26 = smov 0   ;;  %s4406_s27 = smov 0  }
   0x3 LB: > { %s4421_s28 = sadd.s32 4294967295, %s4341_s27   ;;  %s3747_s29 = sadd.s32 4294967294, %s4341_s27   ;;  %s4341_s27 = sphi %s4406_s27, %s5543_s27   ;;  %s4337_s26 = sphi %s4404_s26, %s5542_s26   ;;  %s4333_s25 = sphi %s4402_s25, %s5541_s25   ;;  %s4329_s24 = sphi %s4400_s24, %s5540_s24  }
   0x4   : > { %s4425_s30 = sadd.s32 1, %s4341_s27   ;;  %s179_s8 = sadd.s32 1, %s4337_s26 }
   0x5   : > { %s176_s9 = ssub.s32 %s4341_s27, %s4425_s30  ;;  %p189_p0 = scmp.ne.s32.totalorder %s4337_s26, %s4333_s25 }
   0x6   : > { %p177_p1 = scmp.eq.s32.totalorder %s176_s9, 0  ;;  %p190_p2 = scmp.eq.s32.totalorder %s4421_s28, 1 }
   0x7   : > { %p195_p3 = scmp.ne.s32.totalorder %s4333_s25, %s4329_s24  ;;  %p196_p4 = scmp.eq.s32.totalorder %s3747_s29, 1 }
   0x8   : > { %s4436_s10 = scalar_select %p177_p1, %s4337_s26, %s179_s8  }
   0x9   : > { %p4438_p5 = por %p190_p2, %p189_p0  ;;  %p4442_p6 = por %p196_p4, %p195_p3 }
   0xa   : > { %p3750_p7 = scmp.ge.s32.totalorder %s4341_s27, 1  ;;  %p240_p8 = scmp.lt.s32.totalorder %s4341_s27, 3 }
   0xc   : > { %p241_p9 = pnand %p3750_p7, %p240_p8 }
   0xd   : > { %s269_s13 = sand.u32 (!%p241_p9), 1, %s4333_s25   ;;  %p271_p10 = scmp.lt.s32.totalorder (!%p241_p9), %s4421_s28, 1 }
   0xe   : > { %244 = sbr.rel (%p241_p9) target bundleno = 1247 (0x4df), region = 48  ;;  %s5018_s23 = scalar_lea.vmem (!%p241_p9), [#allocation4], %s269_s13 }
   0xf   : > { %s5020_s29 = smov (!%p241_p9), 0  }
  0x13   : > { %vm299_vm0 = vcmask 7168   ;;  %vm303_vm1 = vcmask 5120   ;;  %v276_v0 = vlaneseq  ;;  %v4452_v1 = vld [vmem:[%s5531_s2] ss:$0 sm:$0xff]  ;;  %v4355_v2 = vmov 0.0   ;;  %s272_s18 = scalar_select %p271_p10, %s4421_s28, 1 }
  0x14   : > { %305 = vst.msk [vmem:[#allocation2 + $0x20] sm:$0xff] %vm299_vm0, %v4355_v2  ;;  %300 = vst.msk [vmem:[#allocation2] sm:$0xff] %vm299_vm0, %v4355_v2  ;;  %v4697_v3 = vld [vmem:[%s5533_s4] ss:$0 sm:$0xff]  ;;  %vm421_vm2 = vcmask 64512   ;;  %vm570_vm4 = vcmask 3072  }
  0x15   : > { %301 = vst.msk [vmem:[#allocation2 + $0x8] sm:$0xff] %vm299_vm0, %v4355_v2  ;;  %302 = vst.msk [vmem:[#allocation2 + $0x10] sm:$0xff] %vm299_vm0, %v4355_v2  ;;  %v277_v4 = vshrl.u32 %v276_v0, 7  ;;  %v4702_v5 = vand.u32 127, %v276_v0  ;;  %s4199_s19 = smul.u32 896, %s272_s18 }
  0x16   : > { %306 = vst.msk [vmem:[#allocation2 + $0x28] sm:$0xff] %vm299_vm0, %v4355_v2  ;;  %307 = vst.msk [vmem:[#allocation2 + $0x30] sm:$0xff] %vm299_vm0, %v4355_v2 }
  0x17   : > { %309 = vst.msk [vmem:[#allocation2 + $0x40] sm:$0xff] %vm299_vm0, %v4355_v2  ;;  %310 = vst.msk [vmem:[#allocation2 + $0x48] sm:$0xff] %vm299_vm0, %v4355_v2  ;;  %v278_v6 = vadd.s32 8, %v277_v4  ;;  %v281_v7 = vmul.u32 2, %v277_v4  ;;  %s4778_s22 = scalar_lea.vmem %s5529_s0, %s4199_s19 }
  0x18   : > { %311 = vst.msk [vmem:[#allocation2 + $0x50] sm:$0xff] %vm299_vm0, %v4355_v2  ;;  %313 = vst.msk [vmem:[#allocation2 + $0x60] sm:$0xff] %vm299_vm0, %v4355_v2  ;;  %v454_v12 = vld [vmem:[%s4778_s22] sm:$0xff]  ;;  %v455_v13 = vld [vmem:[%s4778_s22 + $0x8] sm:$0xff] }
  0x19   : > { %314 = vst.msk [vmem:[#allocation2 + $0x68] sm:$0xff] %vm299_vm0, %v4355_v2  ;;  %315 = vst.msk [vmem:[#allocation2 + $0x70] sm:$0xff] %vm299_vm0, %v4355_v2  ;;  %v282_v8 = vmul.u32 2, %v278_v6  ;;  %vm283_vm3 = vcmp.eq.s32.totalorder %v4702_v5, %v281_v7  ;;  %v289_v9 = vadd.s32 1, %v281_v7  ;;  %v456_v14 = vld [vmem:[%s4778_s22 + $0x10] sm:$0xff]  ;;  %v458_v18 = vld [vmem:[%s4778_s22 + $0x20] sm:$0xff] }
  0x1a   : > { %317 = vst.msk [vmem:[#allocation2 + $0x80] sm:$0xff] %vm299_vm0, %v4355_v2  ;;  %318 = vst.msk [vmem:[#allocation2 + $0x88] sm:$0xff] %vm299_vm0, %v4355_v2  ;;  %v4773_v10 = vsel %vm283_vm3, 1.0, %v4355_v2  ;;  %v457_v17 = vld [vmem:[%s4778_s22 + $0x18] sm:$0xf]  ;;  %v459_v19 = vld [vmem:[%s4778_s22 + $0x28] sm:$0xff] }
  0x1b   : > { %319 = vst.msk [vmem:[#allocation2 + $0x90] sm:$0xff] %vm299_vm0, %v4355_v2  ;;  %321 = vst.msk [vmem:[#allocation2 + $0xa0] sm:$0xff] %vm299_vm0, %v4355_v2  ;;  %vm284_vm5 = vcmp.eq.s32.totalorder %v4702_v5, %v282_v8  ;;  %v290_v11 = vadd.s32 1, %v282_v8  ;;  %vm291_vm6 = vcmp.eq.s32.totalorder %v4702_v5, %v289_v9  ;;  %v460_v20 = vld [vmem:[%s4778_s22 + $0x30] sm:$0xff]  ;;  %v461_v21 = vld [vmem:[%s4778_s22 + $0x38] sm:$0xf] }
  0x1c   : > { %322 = vst.msk [vmem:[#allocation2 + $0xa8] sm:$0xff] %vm299_vm0, %v4355_v2  ;;  %323 = vst.msk [vmem:[#allocation2 + $0xb0] sm:$0xff] %vm299_vm0, %v4355_v2  ;;  %v4786_v15 = vsel %vm284_vm5, 1.0, %v4355_v2  ;;  %v4789_v16 = vsel %vm291_vm6, 1.0, %v4355_v2  ;;  %v462_v22 = vld [vmem:[%s4778_s22 + $0x40] sm:$0xff]  ;;  %v463_v24 = vld [vmem:[%s4778_s22 + $0x48] sm:$0xff] }
  0x1d   : > { %325 = vst.msk [vmem:[#allocation2 + $0xc0] sm:$0xff] %vm299_vm0, %v4355_v2  ;;  %326 = vst.msk [vmem:[#allocation2 + $0xc8] sm:$0xff] %vm299_vm0, %v4355_v2  ;;  %vm292_vm7 = vcmp.eq.s32.totalorder %v4702_v5, %v290_v11  ;;  %v464_v25 = vld [vmem:[%s4778_s22 + $0x50] sm:$0xff]  ;;  %v465_v26 = vld [vmem:[%s4778_s22 + $0x58] sm:$0xf] }
  0x1e   : > { %327 = vst.msk [vmem:[#allocation2 + $0xd0] sm:$0xff] %vm299_vm0, %v4355_v2  ;;  %329 = vst.msk [vmem:[#allocation2 + $0xe0] sm:$0xff] %vm299_vm0, %v4355_v2  ;;  %v4805_v23 = vsel %vm292_vm7, 1.0, %v4355_v2  ;;  %v466_v27 = vld [vmem:[%s4778_s22 + $0x60] sm:$0xff]  ;;  %v467_v28 = vld [vmem:[%s4778_s22 + $0x68] sm:$0xff] }
  0x1f   : > { %330 = vst.msk [vmem:[#allocation2 + $0xe8] sm:$0xff] %vm299_vm0, %v4355_v2  ;;  %331 = vst.msk [vmem:[#allocation2 + $0xf0] sm:$0xff] %vm299_vm0, %v4355_v2  ;;  %v468_v29 = vld [vmem:[%s4778_s22 + $0x70] sm:$0xff]  ;;  %v469_v30 = vld [vmem:[%s4778_s22 + $0x78] sm:$0xf] }
  0x20   : > { %333 = vst.msk [vmem:[#allocation2 + $0x100] sm:$0xff] %vm299_vm0, %v4355_v2  ;;  %334 = vst.msk [vmem:[#allocation2 + $0x108] sm:$0xff] %vm299_vm0, %v4355_v2  ;;  %v470_v31 = vld [vmem:[%s4778_s22 + $0x80] sm:$0xff]  ;;  %v471_v32 = vld [vmem:[%s4778_s22 + $0x88] sm:$0xff] }
  0x21   : > { %335 = vst.msk [vmem:[#allocation2 + $0x110] sm:$0xff] %vm299_vm0, %v4355_v2  ;;  %337 = vst.msk [vmem:[#allocation2 + $0x120] sm:$0xff] %vm299_vm0, %v4355_v2  ;;  %v472_v33 = vld [vmem:[%s4778_s22 + $0x90] sm:$0xff]  ;;  %v473_v34 = vld [vmem:[%s4778_s22 + $0x98] sm:$0xf] }
  0x22   : > { %338 = vst.msk [vmem:[#allocation2 + $0x128] sm:$0xff] %vm299_vm0, %v4355_v2  ;;  %339 = vst.msk [vmem:[#allocation2 + $0x130] sm:$0xff] %vm299_vm0, %v4355_v2  ;;  %v474_v35 = vld [vmem:[%s4778_s22 + $0xa0] sm:$0xff]  ;;  %v475_v36 = vld [vmem:[%s4778_s22 + $0xa8] sm:$0xff] }
  0x23   : > { %341 = vst.msk [vmem:[#allocation2 + $0x140] sm:$0xff] %vm299_vm0, %v4355_v2  ;;  %342 = vst.msk [vmem:[#allocation2 + $0x148] sm:$0xff] %vm299_vm0, %v4355_v2  ;;  %v476_v37 = vld [vmem:[%s4778_s22 + $0xb0] sm:$0xff]  ;;  %v477_v38 = vld [vmem:[%s4778_s22 + $0xb8] sm:$0xf] }
  0x24   : > { %343 = vst.msk [vmem:[#allocation2 + $0x150] sm:$0xff] %vm299_vm0, %v4355_v2  ;;  %345 = vst.msk [vmem:[#allocation2 + $0x160] sm:$0xff] %vm299_vm0, %v4355_v2  ;;  %v478_v39 = vld [vmem:[%s4778_s22 + $0xc0] sm:$0xff]  ;;  %v479_v40 = vld [vmem:[%s4778_s22 + $0xc8] sm:$0xff] }
  0x25   : > { %346 = vst.msk [vmem:[#allocation2 + $0x168] sm:$0xff] %vm299_vm0, %v4355_v2  ;;  %347 = vst.msk [vmem:[#allocation2 + $0x170] sm:$0xff] %vm299_vm0, %v4355_v2  ;;  %v480_v41 = vld [vmem:[%s4778_s22 + $0xd0] sm:$0xff]  ;;  %v481_v42 = vld [vmem:[%s4778_s22 + $0xd8] sm:$0xf] }
  0x26   : > { %349 = vst.msk [vmem:[#allocation2 + $0x180] sm:$0xff] %vm299_vm0, %v4355_v2  ;;  %350 = vst.msk [vmem:[#allocation2 + $0x188] sm:$0xff] %vm299_vm0, %v4355_v2  ;;  %v482_v43 = vld [vmem:[%s4778_s22 + $0xe0] sm:$0xff]  ;;  %v483_v44 = vld [vmem:[%s4778_s22 + $0xe8] sm:$0xff] }
  0x27   : > { %351 = vst.msk [vmem:[#allocation2 + $0x190] sm:$0xff] %vm299_vm0, %v4355_v2  ;;  %353 = vst.msk [vmem:[#allocation2 + $0x1a0] sm:$0xff] %vm299_vm0, %v4355_v2  ;;  %v484_v45 = vld [vmem:[%s4778_s22 + $0xf0] sm:$0xff]  ;;  %v485_v46 = vld [vmem:[%s4778_s22 + $0xf8] sm:$0xf] }
  0x28   : > { %354 = vst.msk [vmem:[#allocation2 + $0x1a8] sm:$0xff] %vm299_vm0, %v4355_v2  ;;  %355 = vst.msk [vmem:[#allocation2 + $0x1b0] sm:$0xff] %vm299_vm0, %v4355_v2  ;;  %v486_v47 = vld [vmem:[%s4778_s22 + $0x100] sm:$0xff]  ;;  %v487_v48 = vld [vmem:[%s4778_s22 + $0x108] sm:$0xff] }
  0x29   : > { %357 = vst.msk [vmem:[#allocation2 + $0x1c0] sm:$0xff] %vm299_vm0, %v4355_v2  ;;  %358 = vst.msk [vmem:[#allocation2 + $0x1c8] sm:$0xff] %vm299_vm0, %v4355_v2  ;;  %v488_v49 = vld [vmem:[%s4778_s22 + $0x110] sm:$0xff]  ;;  %v489_v50 = vld [vmem:[%s4778_s22 + $0x118] sm:$0xf] }
  0x2a   : > { %359 = vst.msk [vmem:[#allocation2 + $0x1d0] sm:$0xff] %vm299_vm0, %v4355_v2  ;;  %361 = vst.msk [vmem:[#allocation2 + $0x1e0] sm:$0xff] %vm299_vm0, %v4355_v2  ;;  %v490_v51 = vld [vmem:[%s4778_s22 + $0x120] sm:$0xff]  ;;  %v491_v52 = vld [vmem:[%s4778_s22 + $0x128] sm:$0xff] }
  0x2b   : > { %362 = vst.msk [vmem:[#allocation2 + $0x1e8] sm:$0xff] %vm299_vm0, %v4355_v2  ;;  %363 = vst.msk [vmem:[#allocation2 + $0x1f0] sm:$0xff] %vm299_vm0, %v4355_v2  ;;  %v492_v53 = vld [vmem:[%s4778_s22 + $0x130] sm:$0xff]  ;;  %v493_v54 = vld [vmem:[%s4778_s22 + $0x138] sm:$0xf] }
  0x2c   : > { %365 = vst.msk [vmem:[#allocation2 + $0x200] sm:$0xff] %vm299_vm0, %v4355_v2  ;;  %366 = vst.msk [vmem:[#allocation2 + $0x208] sm:$0xff] %vm299_vm0, %v4355_v2  ;;  %v494_v55 = vld [vmem:[%s4778_s22 + $0x140] sm:$0xff]  ;;  %v495_v56 = vld [vmem:[%s4778_s22 + $0x148] sm:$0xff] }
  0x2d   : > { %367 = vst.msk [vmem:[#allocation2 + $0x210] sm:$0xff] %vm299_vm0, %v4355_v2  ;;  %369 = vst.msk [vmem:[#allocation2 + $0x220] sm:$0xff] %vm299_vm0, %v4355_v2  ;;  %v496_v57 = vld [vmem:[%s4778_s22 + $0x150] sm:$0xff]  ;;  %v497_v58 = vld [vmem:[%s4778_s22 + $0x158] sm:$0xf] }
  0x2e   : > { %370 = vst.msk [vmem:[#allocation2 + $0x228] sm:$0xff] %vm299_vm0, %v4355_v2  ;;  %371 = vst.msk [vmem:[#allocation2 + $0x230] sm:$0xff] %vm299_vm0, %v4355_v2  ;;  %v498_v59 = vld [vmem:[%s4778_s22 + $0x160] sm:$0xff]  ;;  %v499_v60 = vld [vmem:[%s4778_s22 + $0x168] sm:$0xff] }
  0x2f   : > { %373 = vst.msk [vmem:[#allocation2 + $0x240] sm:$0xff] %vm299_vm0, %v4355_v2  ;;  %374 = vst.msk [vmem:[#allocation2 + $0x248] sm:$0xff] %vm299_vm0, %v4355_v2  ;;  %v500_v61 = vld [vmem:[%s4778_s22 + $0x170] sm:$0xff]  ;;  %v501_v62 = vld [vmem:[%s4778_s22 + $0x178] sm:$0xf] }
  0x30   : > { %375 = vst.msk [vmem:[#allocation2 + $0x250] sm:$0xff] %vm299_vm0, %v4355_v2  ;;  %377 = vst.msk [vmem:[#allocation2 + $0x260] sm:$0xff] %vm299_vm0, %v4355_v2  ;;  %v502_v63 = vld [vmem:[%s4778_s22 + $0x180] sm:$0xff]  ;;  %v503_v0 = vld [vmem:[%s4778_s22 + $0x188] sm:$0xff] }
  0x31   : > { %378 = vst.msk [vmem:[#allocation2 + $0x268] sm:$0xff] %vm299_vm0, %v4355_v2  ;;  %379 = vst.msk [vmem:[#allocation2 + $0x270] sm:$0xff] %vm299_vm0, %v4355_v2  ;;  %v505_v4 = vld [vmem:[%s4778_s22 + $0x198] sm:$0xf]  ;;  %v506_v5 = vld [vmem:[%s4778_s22 + $0x1a0] sm:$0xff] }
  0x32   : > { %381 = vst.msk [vmem:[#allocation2 + $0x280] sm:$0xff] %vm299_vm0, %v4355_v2  ;;  %382 = vst.msk [vmem:[#allocation2 + $0x288] sm:$0xff] %vm299_vm0, %v4355_v2  ;;  %v507_v6 = vld [vmem:[%s4778_s22 + $0x1a8] sm:$0xff]  ;;  %v508_v7 = vld [vmem:[%s4778_s22 + $0x1b0] sm:$0xff] }
  0x33   : > { %383 = vst.msk [vmem:[#allocation2 + $0x290] sm:$0xff] %vm299_vm0, %v4355_v2  ;;  %385 = vst.msk [vmem:[#allocation2 + $0x2a0] sm:$0xff] %vm299_vm0, %v4355_v2  ;;  %v509_v8 = vld [vmem:[%s4778_s22 + $0x1b8] sm:$0xf]  ;;  %v510_v9 = vld [vmem:[%s4778_s22 + $0x1c0] sm:$0xff] }
  0x34   : > { %386 = vst.msk [vmem:[#allocation2 + $0x2a8] sm:$0xff] %vm299_vm0, %v4355_v2  ;;  %387 = vst.msk [vmem:[#allocation2 + $0x2b0] sm:$0xff] %vm299_vm0, %v4355_v2  ;;  %v511_v11 = vld [vmem:[%s4778_s22 + $0x1c8] sm:$0xff] }
  0x35   : > { %389 = vst.msk [vmem:[#allocation2 + $0x2c0] sm:$0xff] %vm299_vm0, %v4355_v2  ;;  %390 = vst.msk [vmem:[#allocation2 + $0x2c8] sm:$0xff] %vm299_vm0, %v4355_v2 }
  0x36   : > { %391 = vst.msk [vmem:[#allocation2 + $0x2d0] sm:$0xff] %vm299_vm0, %v4355_v2  ;;  %393 = vst.msk [vmem:[#allocation2 + $0x2e0] sm:$0xff] %vm299_vm0, %v4355_v2 }
  0x37   : > { %394 = vst.msk [vmem:[#allocation2 + $0x2e8] sm:$0xff] %vm299_vm0, %v4355_v2  ;;  %395 = vst.msk [vmem:[#allocation2 + $0x2f0] sm:$0xff] %vm299_vm0, %v4355_v2 }
  0x38   : > { %397 = vst.msk [vmem:[#allocation2 + $0x300] sm:$0xff] %vm299_vm0, %v4355_v2  ;;  %398 = vst.msk [vmem:[#allocation2 + $0x308] sm:$0xff] %vm299_vm0, %v4355_v2 }
  0x39   : > { %399 = vst.msk [vmem:[#allocation2 + $0x310] sm:$0xff] %vm299_vm0, %v4355_v2  ;;  %401 = vst.msk [vmem:[#allocation2 + $0x320] sm:$0xff] %vm299_vm0, %v4355_v2 }
  0x3a   : > { %402 = vst.msk [vmem:[#allocation2 + $0x328] sm:$0xff] %vm299_vm0, %v4355_v2  ;;  %403 = vst.msk [vmem:[#allocation2 + $0x330] sm:$0xff] %vm299_vm0, %v4355_v2 }
  0x3b   : > { %405 = vst.msk [vmem:[#allocation2 + $0x340] sm:$0xff] %vm299_vm0, %v4355_v2  ;;  %406 = vst.msk [vmem:[#allocation2 + $0x348] sm:$0xff] %vm299_vm0, %v4355_v2 }
  0x3c   : > { %407 = vst.msk [vmem:[#allocation2 + $0x350] sm:$0xff] %vm299_vm0, %v4355_v2  ;;  %409 = vst.msk [vmem:[#allocation2 + $0x360] sm:$0xff] %vm299_vm0, %v4355_v2 }
  0x3d   : > { %410 = vst.msk [vmem:[#allocation2 + $0x368] sm:$0xff] %vm299_vm0, %v4355_v2  ;;  %411 = vst.msk [vmem:[#allocation2 + $0x370] sm:$0xff] %vm299_vm0, %v4355_v2 }
  0x3e   : > { %413 = vst.msk [vmem:[#allocation2 + $0x380] sm:$0xff] %vm299_vm0, %v4355_v2  ;;  %414 = vst.msk [vmem:[#allocation2 + $0x388] sm:$0xff] %vm299_vm0, %v4355_v2 }
  0x3f   : > { %415 = vst.msk [vmem:[#allocation2 + $0x390] sm:$0xff] %vm299_vm0, %v4355_v2  ;;  %417 = vst.msk [vmem:[#allocation2 + $0x3a0] sm:$0xff] %vm299_vm0, %v4355_v2 }
  0x40   : > { %418 = vst.msk [vmem:[#allocation2 + $0x3a8] sm:$0xff] %vm299_vm0, %v4355_v2  ;;  %419 = vst.msk [vmem:[#allocation2 + $0x3b0] sm:$0xff] %vm299_vm0, %v4355_v2 }
  0x41   : > { %308 = vst.msk [vmem:[#allocation2 + $0x38] sm:$0x3f] %vm303_vm1, %v4355_v2  ;;  %304 = vst.msk [vmem:[#allocation2 + $0x18] sm:$0x3f] %vm303_vm1, %v4355_v2 }
  0x42   : > { %312 = vst.msk [vmem:[#allocation2 + $0x58] sm:$0x3f] %vm303_vm1, %v4355_v2  ;;  %316 = vst.msk [vmem:[#allocation2 + $0x78] sm:$0x3f] %vm303_vm1, %v4355_v2 }
  0x43   : > { %320 = vst.msk [vmem:[#allocation2 + $0x98] sm:$0x3f] %vm303_vm1, %v4355_v2  ;;  %324 = vst.msk [vmem:[#allocation2 + $0xb8] sm:$0x3f] %vm303_vm1, %v4355_v2 }
  0x44   : > { %328 = vst.msk [vmem:[#allocation2 + $0xd8] sm:$0x3f] %vm303_vm1, %v4355_v2  ;;  %332 = vst.msk [vmem:[#allocation2 + $0xf8] sm:$0x3f] %vm303_vm1, %v4355_v2 }
  0x45   : > { %336 = vst.msk [vmem:[#allocation2 + $0x118] sm:$0x3f] %vm303_vm1, %v4355_v2  ;;  %340 = vst.msk [vmem:[#allocation2 + $0x138] sm:$0x3f] %vm303_vm1, %v4355_v2 }
  0x46   : > { %344 = vst.msk [vmem:[#allocation2 + $0x158] sm:$0x3f] %vm303_vm1, %v4355_v2  ;;  %348 = vst.msk [vmem:[#allocation2 + $0x178] sm:$0x3f] %vm303_vm1, %v4355_v2 }
  0x47   : > { %352 = vst.msk [vmem:[#allocation2 + $0x198] sm:$0x3f] %vm303_vm1, %v4355_v2  ;;  %356 = vst.msk [vmem:[#allocation2 + $0x1b8] sm:$0x3f] %vm303_vm1, %v4355_v2 }
  0x48   : > { %360 = vst.msk [vmem:[#allocation2 + $0x1d8] sm:$0x3f] %vm303_vm1, %v4355_v2  ;;  %364 = vst.msk [vmem:[#allocation2 + $0x1f8] sm:$0x3f] %vm303_vm1, %v4355_v2 }
  0x49   : > { %368 = vst.msk [vmem:[#allocation2 + $0x218] sm:$0x3f] %vm303_vm1, %v4355_v2  ;;  %372 = vst.msk [vmem:[#allocation2 + $0x238] sm:$0x3f] %vm303_vm1, %v4355_v2 }
  0x4a   : > { %376 = vst.msk [vmem:[#allocation2 + $0x258] sm:$0x3f] %vm303_vm1, %v4355_v2  ;;  %380 = vst.msk [vmem:[#allocation2 + $0x278] sm:$0x3f] %vm303_vm1, %v4355_v2 }
  0x4b   : > { %384 = vst.msk [vmem:[#allocation2 + $0x298] sm:$0x3f] %vm303_vm1, %v4355_v2  ;;  %388 = vst.msk [vmem:[#allocation2 + $0x2b8] sm:$0x3f] %vm303_vm1, %v4355_v2 }
  0x4c   : > { %392 = vst.msk [vmem:[#allocation2 + $0x2d8] sm:$0x3f] %vm303_vm1, %v4355_v2  ;;  %396 = vst.msk [vmem:[#allocation2 + $0x2f8] sm:$0x3f] %vm303_vm1, %v4355_v2 }
  0x4d   : > { %400 = vst.msk [vmem:[#allocation2 + $0x318] sm:$0x3f] %vm303_vm1, %v4355_v2  ;;  %404 = vst.msk [vmem:[#allocation2 + $0x338] sm:$0x3f] %vm303_vm1, %v4355_v2 }
  0x4e   : > { %408 = vst.msk [vmem:[#allocation2 + $0x358] sm:$0x3f] %vm303_vm1, %v4355_v2  ;;  %412 = vst.msk [vmem:[#allocation2 + $0x378] sm:$0x3f] %vm303_vm1, %v4355_v2 }
  0x4f   : > { %416 = vst.msk [vmem:[#allocation2 + $0x398] sm:$0x3f] %vm303_vm1, %v4355_v2  ;;  %420 = vst.msk [vmem:[#allocation2 + $0x3b8] sm:$0x3f] %vm303_vm1, %v4355_v2 }
  0x50   : > { %422 = vst.msk [vmem:[#allocation3] sm:$0xff] %vm421_vm2, %v4355_v2  ;;  %423 = vst.msk [vmem:[#allocation3 + $0x8] sm:$0xff] %vm421_vm2, %v4355_v2 }
  0x51   : > { %424 = vst.msk [vmem:[#allocation3 + $0x10] sm:$0xff] %vm421_vm2, %v4355_v2  ;;  %425 = vst.msk [vmem:[#allocation3 + $0x18] sm:$0xff] %vm421_vm2, %v4355_v2 }
  0x52   : > { %426 = vst.msk [vmem:[#allocation3 + $0x20] sm:$0xff] %vm421_vm2, %v4355_v2  ;;  %427 = vst.msk [vmem:[#allocation3 + $0x28] sm:$0xff] %vm421_vm2, %v4355_v2 }
  0x53   : > { %428 = vst.msk [vmem:[#allocation3 + $0x30] sm:$0xff] %vm421_vm2, %v4355_v2  ;;  %429 = vst.msk [vmem:[#allocation3 + $0x38] sm:$0xff] %vm421_vm2, %v4355_v2 }
  0x54   : > { %430 = vst.msk [vmem:[#allocation3 + $0x40] sm:$0xff] %vm421_vm2, %v4355_v2  ;;  %431 = vst.msk [vmem:[#allocation3 + $0x48] sm:$0xff] %vm421_vm2, %v4355_v2 }
  0x55   : > { %432 = vst.msk [vmem:[#allocation3 + $0x50] sm:$0xff] %vm421_vm2, %v4355_v2  ;;  %433 = vst.msk [vmem:[#allocation3 + $0x58] sm:$0xff] %vm421_vm2, %v4355_v2 }
  0x56   : > { %434 = vst.msk [vmem:[#allocation3 + $0x60] sm:$0xff] %vm421_vm2, %v4355_v2  ;;  %435 = vst.msk [vmem:[#allocation3 + $0x68] sm:$0xff] %vm421_vm2, %v4355_v2 }
  0x57   : > { %436 = vst.msk [vmem:[#allocation3 + $0x70] sm:$0xff] %vm421_vm2, %v4355_v2  ;;  %437 = vst.msk [vmem:[#allocation3 + $0x78] sm:$0xff] %vm421_vm2, %v4355_v2 }
  0x58   : > { %438 = vst.msk [vmem:[#allocation3 + $0x80] sm:$0xff] %vm421_vm2, %v4355_v2  ;;  %439 = vst.msk [vmem:[#allocation3 + $0x88] sm:$0xff] %vm421_vm2, %v4355_v2 }
  0x59   : > { %440 = vst.msk [vmem:[#allocation3 + $0x90] sm:$0xff] %vm421_vm2, %v4355_v2  ;;  %441 = vst.msk [vmem:[#allocation3 + $0x98] sm:$0xff] %vm421_vm2, %v4355_v2 }
  0x5a   : > { %442 = vst.msk [vmem:[#allocation3 + $0xa0] sm:$0xff] %vm421_vm2, %v4355_v2  ;;  %443 = vst.msk [vmem:[#allocation3 + $0xa8] sm:$0xff] %vm421_vm2, %v4355_v2 }
  0x5b   : > { %444 = vst.msk [vmem:[#allocation3 + $0xb0] sm:$0xff] %vm421_vm2, %v4355_v2  ;;  %445 = vst.msk [vmem:[#allocation3 + $0xb8] sm:$0xff] %vm421_vm2, %v4355_v2 }
  0x5c   : > { %446 = vst.msk [vmem:[#allocation3 + $0xc0] sm:$0xff] %vm421_vm2, %v4355_v2  ;;  %447 = vst.msk [vmem:[#allocation3 + $0xc8] sm:$0xff] %vm421_vm2, %v4355_v2 }
  0x5d   : > { %448 = vst.msk [vmem:[#allocation3 + $0xd0] sm:$0xff] %vm421_vm2, %v4355_v2  ;;  %449 = vst.msk [vmem:[#allocation3 + $0xd8] sm:$0xff] %vm421_vm2, %v4355_v2 }
  0x5e   : > { %450 = vst.msk [vmem:[#allocation3 + $0xe0] sm:$0xff] %vm421_vm2, %v4355_v2  ;;  %451 = vst.msk [vmem:[#allocation3 + $0xe8] sm:$0xff] %vm421_vm2, %v4355_v2 }
  0x5f   : > { %452 = vst.msk [vmem:[#allocation3 + $0xf0] sm:$0xff] %vm421_vm2, %v4355_v2  ;;  %453 = vst.msk [vmem:[#allocation3 + $0xf8] sm:$0xff] %vm421_vm2, %v4355_v2  ;;  %v504_v2 = vld [vmem:[%s4778_s22 + $0x190] sm:$0xff] }
  0x60   : > { %567 = vst.msk [vmem:[#allocation2 + $0x21] sm:$0xff] %vm299_vm0, %v454_v12  ;;  %568 = vst.msk [vmem:[#allocation2 + $0x29] sm:$0xff] %vm299_vm0, %v455_v13  ;;  %v512_v12 = vld [vmem:[%s4778_s22 + $0x1d0] sm:$0xff]  ;;  %v513_v13 = vld [vmem:[%s4778_s22 + $0x1d8] sm:$0xf] }
  0x61   : > { %569 = vst.msk [vmem:[#allocation2 + $0x31] sm:$0xff] %vm299_vm0, %v456_v14  ;;  %572 = vst.msk [vmem:[#allocation2 + $0x41] sm:$0xff] %vm299_vm0, %v458_v18  ;;  %v514_v14 = vld [vmem:[%s4778_s22 + $0x1e0] sm:$0xff]  ;;  %v516_v18 = vld [vmem:[%s4778_s22 + $0x1f0] sm:$0xff] }
  0x62   : > { %571 = vst.msk [vmem:[#allocation2 + $0x39] sm:$0xf] %vm570_vm4, %v457_v17  ;;  %575 = vst.msk [vmem:[#allocation2 + $0x59] sm:$0xf] %vm570_vm4, %v461_v21  ;;  %v515_v17 = vld [vmem:[%s4778_s22 + $0x1e8] sm:$0xff] }
  0x63   : > { %573 = vst.msk [vmem:[#allocation2 + $0x49] sm:$0xff] %vm299_vm0, %v459_v19  ;;  %574 = vst.msk [vmem:[#allocation2 + $0x51] sm:$0xff] %vm299_vm0, %v460_v20  ;;  %v517_v19 = vld [vmem:[%s4778_s22 + $0x1f8] sm:$0xf]  ;;  %v518_v20 = vld [vmem:[%s4778_s22 + $0x200] sm:$0xff] }
  0x64   : > { %576 = vst.msk [vmem:[#allocation2 + $0x61] sm:$0xff] %vm299_vm0, %v462_v22  ;;  %577 = vst.msk [vmem:[#allocation2 + $0x69] sm:$0xff] %vm299_vm0, %v463_v24  ;;  %v519_v21 = vld [vmem:[%s4778_s22 + $0x208] sm:$0xff]  ;;  %v520_v22 = vld [vmem:[%s4778_s22 + $0x210] sm:$0xff] }
  0x65   : > { %578 = vst.msk [vmem:[#allocation2 + $0x71] sm:$0xff] %vm299_vm0, %v464_v25  ;;  %580 = vst.msk [vmem:[#allocation2 + $0x81] sm:$0xff] %vm299_vm0, %v466_v27  ;;  %v521_v24 = vld [vmem:[%s4778_s22 + $0x218] sm:$0xf]  ;;  %v522_v25 = vld [vmem:[%s4778_s22 + $0x220] sm:$0xff] }
  0x66   : > { %579 = vst.msk [vmem:[#allocation2 + $0x79] sm:$0xf] %vm570_vm4, %v465_v26  ;;  %583 = vst.msk [vmem:[#allocation2 + $0x99] sm:$0xf] %vm570_vm4, %v469_v30  ;;  %v523_v26 = vld [vmem:[%s4778_s22 + $0x228] sm:$0xff]  ;;  %v524_v27 = vld [vmem:[%s4778_s22 + $0x230] sm:$0xff] }
  0x67   : > { %581 = vst.msk [vmem:[#allocation2 + $0x89] sm:$0xff] %vm299_vm0, %v467_v28  ;;  %582 = vst.msk [vmem:[#allocation2 + $0x91] sm:$0xff] %vm299_vm0, %v468_v29  ;;  %v525_v28 = vld [vmem:[%s4778_s22 + $0x238] sm:$0xf]  ;;  %v526_v29 = vld [vmem:[%s4778_s22 + $0x240] sm:$0xff] }
  0x68   : > { %584 = vst.msk [vmem:[#allocation2 + $0xa1] sm:$0xff] %vm299_vm0, %v470_v31  ;;  %585 = vst.msk [vmem:[#allocation2 + $0xa9] sm:$0xff] %vm299_vm0, %v471_v32  ;;  %v527_v30 = vld [vmem:[%s4778_s22 + $0x248] sm:$0xff]  ;;  %v528_v31 = vld [vmem:[%s4778_s22 + $0x250] sm:$0xff] }
  0x69   : > { %586 = vst.msk [vmem:[#allocation2 + $0xb1] sm:$0xff] %vm299_vm0, %v472_v33  ;;  %588 = vst.msk [vmem:[#allocation2 + $0xc1] sm:$0xff] %vm299_vm0, %v474_v35  ;;  %v529_v32 = vld [vmem:[%s4778_s22 + $0x258] sm:$0xf]  ;;  %v530_v33 = vld [vmem:[%s4778_s22 + $0x260] sm:$0xff] }
  0x6a   : > { %587 = vst.msk [vmem:[#allocation2 + $0xb9] sm:$0xf] %vm570_vm4, %v473_v34  ;;  %591 = vst.msk [vmem:[#allocation2 + $0xd9] sm:$0xf] %vm570_vm4, %v477_v38  ;;  %v531_v34 = vld [vmem:[%s4778_s22 + $0x268] sm:$0xff]  ;;  %v532_v35 = vld [vmem:[%s4778_s22 + $0x270] sm:$0xff] }
  0x6b   : > { %589 = vst.msk [vmem:[#allocation2 + $0xc9] sm:$0xff] %vm299_vm0, %v475_v36  ;;  %590 = vst.msk [vmem:[#allocation2 + $0xd1] sm:$0xff] %vm299_vm0, %v476_v37  ;;  %v533_v36 = vld [vmem:[%s4778_s22 + $0x278] sm:$0xf]  ;;  %v534_v37 = vld [vmem:[%s4778_s22 + $0x280] sm:$0xff] }
  0x6c   : > { %592 = vst.msk [vmem:[#allocation2 + $0xe1] sm:$0xff] %vm299_vm0, %v478_v39  ;;  %593 = vst.msk [vmem:[#allocation2 + $0xe9] sm:$0xff] %vm299_vm0, %v479_v40  ;;  %v535_v38 = vld [vmem:[%s4778_s22 + $0x288] sm:$0xff]  ;;  %v536_v39 = vld [vmem:[%s4778_s22 + $0x290] sm:$0xff] }
  0x6d   : > { %594 = vst.msk [vmem:[#allocation2 + $0xf1] sm:$0xff] %vm299_vm0, %v480_v41  ;;  %596 = vst.msk [vmem:[#allocation2 + $0x101] sm:$0xff] %vm299_vm0, %v482_v43  ;;  %v537_v40 = vld [vmem:[%s4778_s22 + $0x298] sm:$0xf]  ;;  %v538_v41 = vld [vmem:[%s4778_s22 + $0x2a0] sm:$0xff] }
  0x6e   : > { %595 = vst.msk [vmem:[#allocation2 + $0xf9] sm:$0xf] %vm570_vm4, %v481_v42  ;;  %599 = vst.msk [vmem:[#allocation2 + $0x119] sm:$0xf] %vm570_vm4, %v485_v46  ;;  %v539_v42 = vld [vmem:[%s4778_s22 + $0x2a8] sm:$0xff]  ;;  %v540_v43 = vld [vmem:[%s4778_s22 + $0x2b0] sm:$0xff] }
  0x6f   : > { %597 = vst.msk [vmem:[#allocation2 + $0x109] sm:$0xff] %vm299_vm0, %v483_v44  ;;  %598 = vst.msk [vmem:[#allocation2 + $0x111] sm:$0xff] %vm299_vm0, %v484_v45  ;;  %v541_v44 = vld [vmem:[%s4778_s22 + $0x2b8] sm:$0xf]  ;;  %v542_v45 = vld [vmem:[%s4778_s22 + $0x2c0] sm:$0xff] }
  0x70   : > { %600 = vst.msk [vmem:[#allocation2 + $0x121] sm:$0xff] %vm299_vm0, %v486_v47  ;;  %601 = vst.msk [vmem:[#allocation2 + $0x129] sm:$0xff] %vm299_vm0, %v487_v48  ;;  %v543_v46 = vld [vmem:[%s4778_s22 + $0x2c8] sm:$0xff]  ;;  %v544_v47 = vld [vmem:[%s4778_s22 + $0x2d0] sm:$0xff] }
  0x71   : > { %602 = vst.msk [vmem:[#allocation2 + $0x131] sm:$0xff] %vm299_vm0, %v488_v49  ;;  %604 = vst.msk [vmem:[#allocation2 + $0x141] sm:$0xff] %vm299_vm0, %v490_v51  ;;  %v545_v48 = vld [vmem:[%s4778_s22 + $0x2d8] sm:$0xf]  ;;  %v546_v49 = vld [vmem:[%s4778_s22 + $0x2e0] sm:$0xff] }
  0x72   : > { %603 = vst.msk [vmem:[#allocation2 + $0x139] sm:$0xf] %vm570_vm4, %v489_v50  ;;  %607 = vst.msk [vmem:[#allocation2 + $0x159] sm:$0xf] %vm570_vm4, %v493_v54  ;;  %v547_v50 = vld [vmem:[%s4778_s22 + $0x2e8] sm:$0xff]  ;;  %v548_v51 = vld [vmem:[%s4778_s22 + $0x2f0] sm:$0xff] }
  0x73   : > { %605 = vst.msk [vmem:[#allocation2 + $0x149] sm:$0xff] %vm299_vm0, %v491_v52  ;;  %606 = vst.msk [vmem:[#allocation2 + $0x151] sm:$0xff] %vm299_vm0, %v492_v53  ;;  %v549_v52 = vld [vmem:[%s4778_s22 + $0x2f8] sm:$0xf]  ;;  %v550_v53 = vld [vmem:[%s4778_s22 + $0x300] sm:$0xff] }
  0x74   : > { %608 = vst.msk [vmem:[#allocation2 + $0x161] sm:$0xff] %vm299_vm0, %v494_v55  ;;  %609 = vst.msk [vmem:[#allocation2 + $0x169] sm:$0xff] %vm299_vm0, %v495_v56  ;;  %v551_v54 = vld [vmem:[%s4778_s22 + $0x308] sm:$0xff]  ;;  %v552_v55 = vld [vmem:[%s4778_s22 + $0x310] sm:$0xff] }
  0x75   : > { %610 = vst.msk [vmem:[#allocation2 + $0x171] sm:$0xff] %vm299_vm0, %v496_v57  ;;  %612 = vst.msk [vmem:[#allocation2 + $0x181] sm:$0xff] %vm299_vm0, %v498_v59  ;;  %v553_v56 = vld [vmem:[%s4778_s22 + $0x318] sm:$0xf]  ;;  %v554_v57 = vld [vmem:[%s4778_s22 + $0x320] sm:$0xff] }
  0x76   : > { %611 = vst.msk [vmem:[#allocation2 + $0x179] sm:$0xf] %vm570_vm4, %v497_v58  ;;  %615 = vst.msk [vmem:[#allocation2 + $0x199] sm:$0xf] %vm570_vm4, %v501_v62  ;;  %v555_v58 = vld [vmem:[%s4778_s22 + $0x328] sm:$0xff]  ;;  %v556_v59 = vld [vmem:[%s4778_s22 + $0x330] sm:$0xff] }
  0x77   : > { %613 = vst.msk [vmem:[#allocation2 + $0x189] sm:$0xff] %vm299_vm0, %v499_v60  ;;  %614 = vst.msk [vmem:[#allocation2 + $0x191] sm:$0xff] %vm299_vm0, %v500_v61  ;;  %v557_v60 = vld [vmem:[%s4778_s22 + $0x338] sm:$0xf]  ;;  %v558_v61 = vld [vmem:[%s4778_s22 + $0x340] sm:$0xff] }
  0x78   : > { %616 = vst.msk [vmem:[#allocation2 + $0x1a1] sm:$0xff] %vm299_vm0, %v502_v63  ;;  %617 = vst.msk [vmem:[#allocation2 + $0x1a9] sm:$0xff] %vm299_vm0, %v503_v0  ;;  %v559_v62 = vld [vmem:[%s4778_s22 + $0x348] sm:$0xff]  ;;  %v560_v63 = vld [vmem:[%s4778_s22 + $0x350] sm:$0xff] }
  0x79   : > { %618 = vst.msk [vmem:[#allocation2 + $0x1b1] sm:$0xff] %vm299_vm0, %v504_v2  ;;  %620 = vst.msk [vmem:[#allocation2 + $0x1c1] sm:$0xff] %vm299_vm0, %v506_v5  ;;  %v561_v0 = vld [vmem:[%s4778_s22 + $0x358] sm:$0xf]  ;;  %v562_v2 = vld [vmem:[%s4778_s22 + $0x360] sm:$0xff] }
  0x7a   : > { %619 = vst.msk [vmem:[#allocation2 + $0x1b9] sm:$0xf] %vm570_vm4, %v505_v4  ;;  %623 = vst.msk [vmem:[#allocation2 + $0x1d9] sm:$0xf] %vm570_vm4, %v509_v8  ;;  %v563_v4 = vld [vmem:[%s4778_s22 + $0x368] sm:$0xff]  ;;  %v564_v5 = vld [vmem:[%s4778_s22 + $0x370] sm:$0xff] }
  0x7b   : > { %621 = vst.msk [vmem:[#allocation2 + $0x1c9] sm:$0xff] %vm299_vm0, %v507_v6  ;;  %622 = vst.msk [vmem:[#allocation2 + $0x1d1] sm:$0xff] %vm299_vm0, %v508_v7  ;;  %v565_v6 = vld [vmem:[%s4778_s22 + $0x378] sm:$0xf] }
  0x7c   : > { %624 = vst.msk [vmem:[#allocation2 + $0x1e1] sm:$0xff] %vm299_vm0, %v510_v9  ;;  %625 = vst.msk [vmem:[#allocation2 + $0x1e9] sm:$0xff] %vm299_vm0, %v511_v11 }
  0x7d   : > { %626 = vst.msk [vmem:[#allocation2 + $0x1f1] sm:$0xff] %vm299_vm0, %v512_v12  ;;  %628 = vst.msk [vmem:[#allocation2 + $0x201] sm:$0xff] %vm299_vm0, %v514_v14 }
  0x7e   : > { %627 = vst.msk [vmem:[#allocation2 + $0x1f9] sm:$0xf] %vm570_vm4, %v513_v13  ;;  %631 = vst.msk [vmem:[#allocation2 + $0x219] sm:$0xf] %vm570_vm4, %v517_v19 }
  0x7f   : > { %629 = vst.msk [vmem:[#allocation2 + $0x209] sm:$0xff] %vm299_vm0, %v515_v17  ;;  %630 = vst.msk [vmem:[#allocation2 + $0x211] sm:$0xff] %vm299_vm0, %v516_v18 }
  0x80   : > { %632 = vst.msk [vmem:[#allocation2 + $0x221] sm:$0xff] %vm299_vm0, %v518_v20  ;;  %633 = vst.msk [vmem:[#allocation2 + $0x229] sm:$0xff] %vm299_vm0, %v519_v21 }
  0x81   : > { %634 = vst.msk [vmem:[#allocation2 + $0x231] sm:$0xff] %vm299_vm0, %v520_v22  ;;  %636 = vst.msk [vmem:[#allocation2 + $0x241] sm:$0xff] %vm299_vm0, %v522_v25 }
  0x82   : > { %635 = vst.msk [vmem:[#allocation2 + $0x239] sm:$0xf] %vm570_vm4, %v521_v24  ;;  %639 = vst.msk [vmem:[#allocation2 + $0x259] sm:$0xf] %vm570_vm4, %v525_v28 }
  0x83   : > { %637 = vst.msk [vmem:[#allocation2 + $0x249] sm:$0xff] %vm299_vm0, %v523_v26  ;;  %638 = vst.msk [vmem:[#allocation2 + $0x251] sm:$0xff] %vm299_vm0, %v524_v27 }
  0x84   : > { %640 = vst.msk [vmem:[#allocation2 + $0x261] sm:$0xff] %vm299_vm0, %v526_v29  ;;  %641 = vst.msk [vmem:[#allocation2 + $0x269] sm:$0xff] %vm299_vm0, %v527_v30 }
  0x85   : > { %642 = vst.msk [vmem:[#allocation2 + $0x271] sm:$0xff] %vm299_vm0, %v528_v31  ;;  %644 = vst.msk [vmem:[#allocation2 + $0x281] sm:$0xff] %vm299_vm0, %v530_v33 }
  0x86   : > { %643 = vst.msk [vmem:[#allocation2 + $0x279] sm:$0xf] %vm570_vm4, %v529_v32  ;;  %647 = vst.msk [vmem:[#allocation2 + $0x299] sm:$0xf] %vm570_vm4, %v533_v36 }
  0x87   : > { %645 = vst.msk [vmem:[#allocation2 + $0x289] sm:$0xff] %vm299_vm0, %v531_v34  ;;  %646 = vst.msk [vmem:[#allocation2 + $0x291] sm:$0xff] %vm299_vm0, %v532_v35 }
  0x88   : > { %648 = vst.msk [vmem:[#allocation2 + $0x2a1] sm:$0xff] %vm299_vm0, %v534_v37  ;;  %649 = vst.msk [vmem:[#allocation2 + $0x2a9] sm:$0xff] %vm299_vm0, %v535_v38 }
  0x89   : > { %650 = vst.msk [vmem:[#allocation2 + $0x2b1] sm:$0xff] %vm299_vm0, %v536_v39  ;;  %652 = vst.msk [vmem:[#allocation2 + $0x2c1] sm:$0xff] %vm299_vm0, %v538_v41 }
  0x8a   : > { %651 = vst.msk [vmem:[#allocation2 + $0x2b9] sm:$0xf] %vm570_vm4, %v537_v40  ;;  %655 = vst.msk [vmem:[#allocation2 + $0x2d9] sm:$0xf] %vm570_vm4, %v541_v44 }
  0x8b   : > { %653 = vst.msk [vmem:[#allocation2 + $0x2c9] sm:$0xff] %vm299_vm0, %v539_v42  ;;  %654 = vst.msk [vmem:[#allocation2 + $0x2d1] sm:$0xff] %vm299_vm0, %v540_v43 }
  0x8c   : > { %656 = vst.msk [vmem:[#allocation2 + $0x2e1] sm:$0xff] %vm299_vm0, %v542_v45  ;;  %657 = vst.msk [vmem:[#allocation2 + $0x2e9] sm:$0xff] %vm299_vm0, %v543_v46 }
  0x8d   : > { %658 = vst.msk [vmem:[#allocation2 + $0x2f1] sm:$0xff] %vm299_vm0, %v544_v47  ;;  %660 = vst.msk [vmem:[#allocation2 + $0x301] sm:$0xff] %vm299_vm0, %v546_v49 }
  0x8e   : > { %659 = vst.msk [vmem:[#allocation2 + $0x2f9] sm:$0xf] %vm570_vm4, %v545_v48  ;;  %663 = vst.msk [vmem:[#allocation2 + $0x319] sm:$0xf] %vm570_vm4, %v549_v52 }
  0x8f   : > { %661 = vst.msk [vmem:[#allocation2 + $0x309] sm:$0xff] %vm299_vm0, %v547_v50  ;;  %662 = vst.msk [vmem:[#allocation2 + $0x311] sm:$0xff] %vm299_vm0, %v548_v51 }
  0x90   : > { %664 = vst.msk [vmem:[#allocation2 + $0x321] sm:$0xff] %vm299_vm0, %v550_v53  ;;  %665 = vst.msk [vmem:[#allocation2 + $0x329] sm:$0xff] %vm299_vm0, %v551_v54 }
  0x91   : > { %666 = vst.msk [vmem:[#allocation2 + $0x331] sm:$0xff] %vm299_vm0, %v552_v55  ;;  %668 = vst.msk [vmem:[#allocation2 + $0x341] sm:$0xff] %vm299_vm0, %v554_v57 }
  0x92   : > { %667 = vst.msk [vmem:[#allocation2 + $0x339] sm:$0xf] %vm570_vm4, %v553_v56  ;;  %671 = vst.msk [vmem:[#allocation2 + $0x359] sm:$0xf] %vm570_vm4, %v557_v60 }
  0x93   : > { %669 = vst.msk [vmem:[#allocation2 + $0x349] sm:$0xff] %vm299_vm0, %v555_v58  ;;  %670 = vst.msk [vmem:[#allocation2 + $0x351] sm:$0xff] %vm299_vm0, %v556_v59 }
  0x94   : > { %672 = vst.msk [vmem:[#allocation2 + $0x361] sm:$0xff] %vm299_vm0, %v558_v61  ;;  %673 = vst.msk [vmem:[#allocation2 + $0x369] sm:$0xff] %vm299_vm0, %v559_v62 }
  0x95   : > { %674 = vst.msk [vmem:[#allocation2 + $0x371] sm:$0xff] %vm299_vm0, %v560_v63  ;;  %676 = vst.msk [vmem:[#allocation2 + $0x381] sm:$0xff] %vm299_vm0, %v562_v2 }
  0x96   : > { %675 = vst.msk [vmem:[#allocation2 + $0x379] sm:$0xf] %vm570_vm4, %v561_v0  ;;  %679 = vst.msk [vmem:[#allocation2 + $0x399] sm:$0xf] %vm570_vm4, %v565_v6 }
  0x97   : > { %677 = vst.msk [vmem:[#allocation2 + $0x389] sm:$0xff] %vm299_vm0, %v563_v4  ;;  %678 = vst.msk [vmem:[#allocation2 + $0x391] sm:$0xff] %vm299_vm0, %v564_v5 }
  0x98 LB: >> { %v4356_v7 = vmov 0   ;;  %s3923_s8 = sshll.u32 %s4345_s29, 6  ;;  %vm1194_vm8 = vcmask 228352   ;;  %v5083_v0 = vld [vmem:[%s5530_s1] ss:$0 sm:$0xff]  ;;  %vm1201_vm9 = vcmask 1043456   ;;  %s4345_s29 = sphi %s5020_s29, %s685_s29  }
  0x99   : >> { %4268 = vset.pattern.permute.xlu1 %v4356_v7  ;;  %4267 = vset.pattern.permute.xlu0 %v4356_v7  ;;  %s5026_s9 = scalar_lea.vmem [#allocation2], %s3923_s8  ;;  %v5088_v5 = vld [vmem:[%s5530_s1 + $0x1] ss:$0 sm:$0xff]  ;;  %s3816_s21 = sshll.u32 %s4345_s29, 4  ;;  %vm1367_vm10 = vcmask 62464  }
  0x9a   : >> { %4032 = vmatprep.mubr.msk.f32.mxu0 %vm1194_vm8, %v4773_v10  ;;  %4043 = vmatprep.mubr.msk.f32.mxu1 %vm1194_vm8, %v4789_v16  ;;  %s3665_s22 = scalar_lea.vmem [#allocation3], %s3816_s21  ;;  %s685_s29 = sadd.s32 1, %s4345_s29  }
  0x9b   : >> { %p682_p11 = scmp.ge.s32.totalorder %s685_s29, 14  }
  0x9c   : > { %s5289_s14 = smov (%p682_p11), 0  }
  0x9e   : >> { %v699_v8 = vld [vmem:[%s5026_s9 + $0x18] sm:$0xf]  ;;  %v698_v9 = vld [vmem:[%s5026_s9 + $0x10] sm:$0xff]  ;;  %v697_v18 = vld [vmem:[%s5026_s9 + $0x8] sm:$0xff] }
  0x9f   : >> { %718 = vperm.xlu0 %4267, %v699_v8   ;;  %713 = vperm.xlu1 %4268, %v698_v9   ;;  %v3767_v11 = vld [vmem:[%s5026_s9 + $0x38] sm:$0xf]  ;;  %v3766_v13 = vld [vmem:[%s5026_s9 + $0x30] sm:$0xff]  ;;  %v3765_v19 = vld [vmem:[%s5026_s9 + $0x28] sm:$0xff] }
  0xa0   : >> { %v736_v12 = vld [vmem:[%s5026_s9 + $0x19] sm:$0xf]  ;;  %v735_v17 = vld [vmem:[%s5026_s9 + $0x11] sm:$0xff]  ;;  %v734_v24 = vld [vmem:[%s5026_s9 + $0x9] sm:$0xff] }
  0xa1   : >> { %v3772_v14 = vld [vmem:[%s5026_s9 + $0x39] sm:$0xf]  ;;  %v3771_v22 = vld [vmem:[%s5026_s9 + $0x31] sm:$0xff]  ;;  %v696_v25 = vld [vmem:[%s5026_s9] sm:$0xff] }
  0xa2   : >> { %v773_v20 = vld [vmem:[%s5026_s9 + $0x1a] sm:$0xf]  ;;  %v3764_v26 = vld [vmem:[%s5026_s9 + $0x20] sm:$0xff]  ;;  %v772_v27 = vld [vmem:[%s5026_s9 + $0x12] sm:$0xff] }
  0xa3   : >> { %832 = vperm.xlu0 %4267, %v3767_v11   ;;  %755 = vperm.xlu1 %4268, %v736_v12   ;;  %v3777_v21 = vld [vmem:[%s5026_s9 + $0x3a] sm:$0xf]  ;;  %v3776_v28 = vld [vmem:[%s5026_s9 + $0x32] sm:$0xff]  ;;  %v3770_v29 = vld [vmem:[%s5026_s9 + $0x29] sm:$0xff] }
  0xa4   : >> { %v733_v30 = vld [vmem:[%s5026_s9 + $0x1] sm:$0xff]  ;;  %v3784_v31 = vld [vmem:[%s5026_s9 + $0x58] sm:$0xf]  ;;  %v771_v33 = vld [vmem:[%s5026_s9 + $0xa] sm:$0xff] }
  0xa5   : >> { %v3769_v32 = vld [vmem:[%s5026_s9 + $0x21] sm:$0xff]  ;;  %v3783_v34 = vld [vmem:[%s5026_s9 + $0x50] sm:$0xff]  ;;  %v3789_v37 = vld [vmem:[%s5026_s9 + $0x59] sm:$0xf] }
  0xa6   : >> { %v3775_v35 = vld [vmem:[%s5026_s9 + $0x2a] sm:$0xff]  ;;  %v770_v36 = vld [vmem:[%s5026_s9 + $0x2] sm:$0xff]  ;;  %v3794_v40 = vld [vmem:[%s5026_s9 + $0x5a] sm:$0xf] }
  0xa7   : >> { %827 = vperm.xlu0 %4267, %v3766_v13   ;;  %869 = vperm.xlu1 %4268, %v3772_v14   ;;  %v3782_v38 = vld [vmem:[%s5026_s9 + $0x48] sm:$0xff]  ;;  %v3788_v41 = vld [vmem:[%s5026_s9 + $0x51] sm:$0xff]  ;;  %v3781_v43 = vld [vmem:[%s5026_s9 + $0x40] sm:$0xff] }
  0xa8   : >> { %v3774_v39 = vld [vmem:[%s5026_s9 + $0x22] sm:$0xff]  ;;  %v3801_v44 = vld [vmem:[%s5026_s9 + $0x78] sm:$0xf]  ;;  %v3792_v46 = vld [vmem:[%s5026_s9 + $0x4a] sm:$0xff] }
  0xa9   : >> { %v3787_v42 = vld [vmem:[%s5026_s9 + $0x49] sm:$0xff]  ;;  %v3793_v45 = vld [vmem:[%s5026_s9 + $0x52] sm:$0xff]  ;;  %v3786_v47 = vld [vmem:[%s5026_s9 + $0x41] sm:$0xff] }
  0xaa   : >> { %v3805_v48 = vld [vmem:[%s5026_s9 + $0x79] sm:$0xf]  ;;  %v3800_v49 = vld [vmem:[%s5026_s9 + $0x70] sm:$0xff]  ;;  %v3799_v50 = vld [vmem:[%s5026_s9 + $0x68] sm:$0xff] }
  0xab   : >> { %750 = vperm.xlu1 %4268, %v735_v17   ;;  %708 = vperm.xlu0 %4267, %v697_v18   ;;  %v3791_v51 = vld [vmem:[%s5026_s9 + $0x42] sm:$0xff]  ;;  %v3809_v52 = vld [vmem:[%s5026_s9 + $0x7a] sm:$0xf]  ;;  %v3804_v53 = vld [vmem:[%s5026_s9 + $0x71] sm:$0xff] }
  0xac   : >> { %v3803_v54 = vld [vmem:[%s5026_s9 + $0x69] sm:$0xff]  ;;  %v3798_v55 = vld [vmem:[%s5026_s9 + $0x60] sm:$0xff]  ;;  %v3808_v57 = vld [vmem:[%s5026_s9 + $0x72] sm:$0xff] }
  0xad   : >> { %v3802_v56 = vld [vmem:[%s5026_s9 + $0x61] sm:$0xff]  ;;  %v3807_v59 = vld [vmem:[%s5026_s9 + $0x6a] sm:$0xff] }
  0xae   : >> { %v3806_v58 = vld [vmem:[%s5026_s9 + $0x62] sm:$0xff] }
  0xaf   : >> { %822 = vperm.xlu1 %4268, %v3765_v19   ;;  %792 = vperm.xlu0 %4267, %v773_v20   ;;  %v5095_v11 = vld [vmem:[%s5530_s1 + $0x2] ss:$0 sm:$0xff]  ;;  %v5101_v13 = vld [vmem:[%s5530_s1 + $0x3] ss:$0 sm:$0xff]  ;;  %v5107_v20 = vld [vmem:[%s5530_s1 + $0x4] ss:$0 sm:$0xff] }
  0xb3   : >> { %906 = vperm.xlu1 %4268, %v3777_v21   ;;  %864 = vperm.xlu0 %4267, %v3771_v22  }
  0xb7   : >> { %745 = vperm.xlu1 %4268, %v734_v24   ;;  %703 = vperm.xlu0 %4267, %v696_v25  }
  0xbb   : >> { %817 = vperm.xlu1 %4268, %v3764_v26   ;;  %787 = vperm.xlu0 %4267, %v772_v27  }
  0xbf   : >> { %901 = vperm.xlu1 %4268, %v3776_v28   ;;  %859 = vperm.xlu0 %4267, %v3770_v29  }
  0xc3   : >> { %740 = vperm.xlu1 %4268, %v733_v30   ;;  %946 = vperm.xlu0 %4267, %v3784_v31  }
  0xc7   : >> { %854 = vperm.xlu1 %4268, %v3769_v32   ;;  %782 = vperm.xlu0 %4267, %v771_v33  }
  0xcb   : >> { %941 = vperm.xlu1 %4268, %v3783_v34   ;;  %896 = vperm.xlu0 %4267, %v3775_v35  }
  0xcf   : >> { %777 = vperm.xlu1 %4268, %v770_v36   ;;  %983 = vperm.xlu0 %4267, %v3789_v37  }
  0xd3   : >> { %936 = vperm.xlu1 %4268, %v3782_v38   ;;  %891 = vperm.xlu0 %4267, %v3774_v39  }
  0xd7   : >> { %1020 = vperm.xlu1 %4268, %v3794_v40   ;;  %978 = vperm.xlu0 %4267, %v3788_v41  }
  0xdb   : >> { %973 = vperm.xlu1 %4268, %v3787_v42   ;;  %931 = vperm.xlu0 %4267, %v3781_v43  }
  0xdf   : >> { %1111 = vperm.xlu1 %4268, %v3801_v44   ;;  %1015 = vperm.xlu0 %4267, %v3793_v45  }
  0xe3   : >> { %1010 = vperm.xlu1 %4268, %v3792_v46   ;;  %968 = vperm.xlu0 %4267, %v3786_v47  }
  0xe7   : >> { %1143 = vperm.xlu1 %4268, %v3805_v48   ;;  %1106 = vperm.xlu0 %4267, %v3800_v49  }
  0xeb   : >> { %1101 = vperm.xlu1 %4268, %v3799_v50   ;;  %1005 = vperm.xlu0 %4267, %v3791_v51  }
  0xef   : >> { %1175 = vperm.xlu1 %4268, %v3809_v52   ;;  %1138 = vperm.xlu0 %4267, %v3804_v53  }
  0xf3   : >> { %1133 = vperm.xlu1 %4268, %v3803_v54   ;;  %1096 = vperm.xlu0 %4267, %v3798_v55  }
  0xf7   : >> { %1128 = vperm.xlu1 %4268, %v3802_v56   ;;  %1170 = vperm.xlu0 %4267, %v3808_v57  }
  0xfb   : >> { %1160 = vperm.xlu1 %4268, %v3806_v58   ;;  %1165 = vperm.xlu0 %4267, %v3807_v59  }
 0x11a   : >> { %v719_v60 = vpop.permute.xlu0 %718  ;;  %v714_v61 = vpop.permute.xlu1 %713 }
 0x11b   : >> { %v728_v6 = vmul.f32 %v5083_v0, %v719_v60  ;;  %v727_v28 = vmul.f32 %v5083_v0, %v714_v61 }
 0x11d   : >> { %v732_v12 = vadd.f32 %v4452_v1, %v728_v6  ;;  %v731_v33 = vadd.f32 %v4452_v1, %v727_v28  ;;  %v5167_v28 = vld [vmem:[%s5530_s1 + $0x6] ss:$0 sm:$0xff] }
 0x11e   : >> { %v833_v62 = vpop.permute.xlu0 %832  ;;  %v756_v63 = vpop.permute.xlu1 %755 }
 0x11f   : >> { %v765_v9 = vmul.f32 %v5088_v5, %v756_v63  ;;  %v842_v21 = vmul.f32 %v5101_v13, %v833_v62  ;;  %v1042_v6 = vmul.f32 %v5083_v0, %v833_v62  ;;  %v5157_v62 = vld [vmem:[%s5530_s1 + $0x5] ss:$0 sm:$0xff] }
 0x121   : >> { %v769_v18 = vadd.f32 %v765_v9, %v732_v12 }
 0x122   : >> { %v828_v2 = vpop.permute.xlu0 %827  ;;  %v870_v4 = vpop.permute.xlu1 %869 }
 0x123   : >> { %v879_v26 = vmul.f32 %v5107_v20, %v870_v4  ;;  %v841_v38 = vmul.f32 %v5101_v13, %v828_v2  ;;  %v1041_v12 = vmul.f32 %v5083_v0, %v828_v2 }
 0x126   : >> { %v751_v7 = vpop.permute.xlu1 %750  ;;  %v709_v8 = vpop.permute.xlu0 %708 }
 0x127   : >> { %v764_v32 = vmul.f32 %v5088_v5, %v751_v7  ;;  %v726_v43 = vmul.f32 %v5083_v0, %v709_v8 }
 0x129   : >> { %v768_v36 = vadd.f32 %v764_v32, %v731_v33  ;;  %v730_v47 = vadd.f32 %v4452_v1, %v726_v43 }
 0x12a   : >> { %v823_v14 = vpop.permute.xlu1 %822  ;;  %v793_v17 = vpop.permute.xlu0 %792 }
 0x12b   : >> { %v802_v19 = vmul.f32 %v5095_v11, %v793_v17  ;;  %v840_v52 = vmul.f32 %v5101_v13, %v823_v14  ;;  %v1050_v17 = vmul.f32 %v5088_v5, %v870_v4 }
 0x12d   : >> { %v806_v22 = vadd.f32 %v802_v19, %v769_v18  ;;  %v1046_v19 = vadd.f32 %v4452_v1, %v1042_v6 }
 0x12e   : >> { %v907_v24 = vpop.permute.xlu1 %906  ;;  %v865_v25 = vpop.permute.xlu0 %864 }
 0x12f   : >> { %v846_v27 = vadd.f32 %v842_v21, %v806_v22  ;;  %v1040_v21 = vmul.f32 %v5083_v0, %v823_v14  ;;  %v1049_v2 = vmul.f32 %v5088_v5, %v865_v25  ;;  %v878_v32 = vmul.f32 %v5107_v20, %v865_v25 }
 0x131   : >> { %v5112_v29 = vadd.f32 %v879_v26, %v846_v27  ;;  %v1058_v27 = vmul.f32 %v5095_v11, %v907_v24 }
 0x132   : >> { %v746_v30 = vpop.permute.xlu1 %745  ;;  %v704_v31 = vpop.permute.xlu0 %703 }
 0x133   : >> { %v763_v46 = vmul.f32 %v5088_v5, %v746_v30  ;;  %v725_v9 = vmul.f32 %v5083_v0, %v704_v31  ;;  %v1045_v30 = vadd.f32 %v4452_v1, %v1041_v12  ;;  %v1054_v31 = vadd.f32 %v1050_v17, %v1046_v19 }
 0x135   : >> { %v767_v50 = vadd.f32 %v763_v46, %v730_v47  ;;  %v729_v4 = vadd.f32 %v4452_v1, %v725_v9 }
 0x136   : >> { %v5116_v34 = vpop.permute.xlu1 %817  ;;  %v788_v35 = vpop.permute.xlu0 %787 }
 0x137   : >> { %v801_v37 = vmul.f32 %v5095_v11, %v788_v35  ;;  %v1039_v33 = vmul.f32 %v5083_v0, %v5116_v34  ;;  %v916_v35 = vmul.f32 %v5157_v62, %v907_v24  ;;  %v1062_v24 = vadd.f32 %v1058_v27, %v1054_v31 }
 0x139   : >> { %v805_v39 = vadd.f32 %v801_v37, %v768_v36  ;;  %v920_v0 = vadd.f32 %v916_v35, %v5112_v29 }
 0x13a   : >> { %v902_v40 = vpop.permute.xlu1 %901  ;;  %v5120_v41 = vpop.permute.xlu0 %859 }
 0x13b   : >> { %v845_v42 = vadd.f32 %v841_v38, %v805_v39  ;;  %v1057_v36 = vmul.f32 %v5095_v11, %v902_v40  ;;  %v1048_v37 = vmul.f32 %v5088_v5, %v5120_v41  ;;  %v1044_v39 = vadd.f32 %v4452_v1, %v1040_v21 }
 0x13c   : >> { %v877_v29 = vmul.f32 %v5107_v20, %v5120_v41 }
 0x13d   : >> { %v882_v43 = vadd.f32 %v878_v32, %v845_v42  ;;  %v915_v42 = vmul.f32 %v5157_v62, %v902_v40  ;;  %v1052_v6 = vadd.f32 %v1048_v37, %v1044_v39 }
 0x13e   : >> { %v741_v44 = vpop.permute.xlu1 %740  ;;  %v947_v45 = vpop.permute.xlu0 %946 }
 0x13f   : >> { %v762_v18 = vmul.f32 %v5088_v5, %v741_v44  ;;  %v956_v44 = vmul.f32 %v5167_v28, %v947_v45  ;;  %v1066_v46 = vmul.f32 %v5101_v13, %v947_v45  ;;  %v5195_v45 = vld [vmem:[%s5530_s1 + $0x7] ss:$0 sm:$0xff] }
 0x141   : >> { %v766_v38 = vadd.f32 %v762_v18, %v729_v4  ;;  %v960_v12 = vadd.f32 %v956_v44, %v920_v0  ;;  %v1070_v17 = vadd.f32 %v1066_v46, %v1062_v24 }
 0x142   : >> { %v5125_v48 = vpop.permute.xlu1 %854  ;;  %v783_v49 = vpop.permute.xlu0 %782 }
 0x143   : >> { %v800_v51 = vmul.f32 %v5095_v11, %v783_v49  ;;  %v1053_v49 = vadd.f32 %v1049_v2, %v1045_v30  ;;  %v876_v21 = vmul.f32 %v5107_v20, %v5125_v48 }
 0x145   : >> { %v804_v53 = vadd.f32 %v800_v51, %v767_v50  ;;  %v839_v51 = vmul.f32 %v5101_v13, %v5116_v34  ;;  %v919_v34 = vadd.f32 %v915_v42, %v882_v43 }
 0x146   : >> { %v5129_v54 = vpop.permute.xlu1 %941  ;;  %v5131_v55 = vpop.permute.xlu0 %896 }
 0x147   : >> { %v5133_v56 = vadd.f32 %v840_v52, %v804_v53  ;;  %v1043_v52 = vadd.f32 %v4452_v1, %v1039_v33  ;;  %v1047_v53 = vmul.f32 %v5088_v5, %v5125_v48  ;;  %v955_v40 = vmul.f32 %v5167_v28, %v5129_v54  ;;  %v5205_v5 = vld [vmem:[%s5530_s1 + $0x8] ss:$0 sm:$0xff] }
 0x148   : >> { %v1056_v31 = vmul.f32 %v5095_v11, %v5131_v55  ;;  %v914_v32 = vmul.f32 %v5157_v62, %v5131_v55 }
 0x149   : >> { %v1051_v4 = vadd.f32 %v1047_v53, %v1043_v52  ;;  %v881_v30 = vadd.f32 %v877_v29, %v5133_v56  ;;  %v959_v35 = vadd.f32 %v955_v40, %v919_v34 }
 0x14a   : >> { %v778_v57 = vpop.permute.xlu1 %777  ;;  %v984_v58 = vpop.permute.xlu0 %983  ;;  %v1060_v46 = vadd.f32 %v1056_v31, %v1052_v6 }
 0x14b   : >> { %v799_v14 = vmul.f32 %v5095_v11, %v778_v57  ;;  %v1061_v57 = vadd.f32 %v1057_v36, %v1053_v49  ;;  %v1074_v9 = vmul.f32 %v5107_v20, %v984_v58  ;;  %v993_v27 = vmul.f32 %v5195_v45, %v984_v58 }
 0x14d   : >> { %v803_v50 = vadd.f32 %v799_v14, %v766_v38  ;;  %v1065_v14 = vmul.f32 %v5101_v13, %v5129_v54  ;;  %v1078_v33 = vadd.f32 %v1074_v9, %v1070_v17  ;;  %v997_v55 = vadd.f32 %v993_v27, %v960_v12 }
 0x14e   : >> { %v5135_v59 = vpop.permute.xlu1 %936  ;;  %v5137_v60 = vpop.permute.xlu0 %891 }
 0x14f   : >> { %v843_v41 = vadd.f32 %v839_v51, %v803_v50  ;;  %v954_v36 = vmul.f32 %v5167_v28, %v5135_v59  ;;  %v1064_v54 = vmul.f32 %v5101_v13, %v5135_v59  ;;  %v1055_v56 = vmul.f32 %v5095_v11, %v5137_v60 }
 0x150   : >> { %v1069_v44 = vadd.f32 %v1065_v14, %v1061_v57  ;;  %v913_v59 = vmul.f32 %v5157_v62, %v5137_v60 }
 0x151   : >> { %v880_v39 = vadd.f32 %v876_v21, %v843_v41  ;;  %v1068_v51 = vadd.f32 %v1064_v54, %v1060_v46  ;;  %v1059_v52 = vadd.f32 %v1055_v56, %v1051_v4 }
 0x152   : >> { %v5139_v61 = vpop.permute.xlu1 %1020  ;;  %v5141_v63 = vpop.permute.xlu0 %978 }
 0x153   : >> { %v1082_v2 = vmul.f32 %v5157_v62, %v5139_v61  ;;  %v1030_v48 = vmul.f32 %v5205_v5, %v5139_v61  ;;  %v992_v0 = vmul.f32 %v5195_v45, %v5141_v63  ;;  %v1073_v11 = vmul.f32 %v5107_v20, %v5141_v63 }
 0x154   : >> { %v917_v29 = vadd.f32 %v913_v59, %v880_v39 }
 0x155   : >> { %v1086_v43 = vadd.f32 %v1082_v2, %v1078_v33  ;;  %v1034_v24 = vadd.f32 %v1030_v48, %v997_v55  ;;  %v996_v34 = vadd.f32 %v992_v0, %v959_v35  ;;  %v1077_v40 = vadd.f32 %v1073_v11, %v1069_v44 }
 0x156   : >> { %v5144_v7 = vpop.permute.xlu1 %973  ;;  %v5146_v8 = vpop.permute.xlu0 %931 }
 0x157   : >> { %v1063_v42 = vmul.f32 %v5101_v13, %v5146_v8  ;;  %v1072_v63 = vmul.f32 %v5107_v20, %v5144_v7  ;;  %v1038_v13 = vmax.f32 %v1034_v24, 0.0  ;;  %v991_v41 = vmul.f32 %v5195_v45, %v5144_v7 }
 0x159   : >> { %v1067_v27 = vadd.f32 %v1063_v42, %v1059_v52 }
 0x15a   : >> { %v1112_v22 = vpop.permute.xlu1 %1111  ;;  %v5159_v26 = vpop.permute.xlu0 %1015 }
 0x15b   : >> { %v1117_v58 = vmul.f32 %v5167_v28, %v1112_v22  ;;  %v918_v22 = vadd.f32 %v914_v32, %v881_v30  ;;  %v1081_v6 = vmul.f32 %v5157_v62, %v5159_v26  ;;  %v1029_v12 = vmul.f32 %v5205_v5, %v5159_v26 }
 0x15c   : >> { %v1076_v32 = vadd.f32 %v1072_v63, %v1068_v51 }
 0x15d   : >> { %v1121_v49 = vadd.f32 %v1117_v58, %v1086_v43  ;;  %v958_v50 = vadd.f32 %v954_v36, %v918_v22  ;;  %v1085_v30 = vadd.f32 %v1081_v6, %v1077_v40  ;;  %v1033_v33 = vadd.f32 %v1029_v12, %v996_v34 }
 0x15e   : >> { %v5181_v47 = vpop.permute.xlu1 %1010  ;;  %v5183_v25 = vpop.permute.xlu0 %968 }
 0x15f   : >> { %v1071_v17 = vmul.f32 %v5107_v20, %v5183_v25  ;;  %v1080_v2 = vmul.f32 %v5157_v62, %v5181_v47  ;;  %v953_v20 = vmul.f32 %v5167_v28, %v5146_v8  ;;  %v1028_v58 = vmul.f32 %v5205_v5, %v5181_v47 }
 0x160   : >> { %v990_v8 = vmul.f32 %v5195_v45, %v5183_v25  ;;  %v995_v47 = vadd.f32 %v991_v41, %v958_v50  ;;  %v1037_v59 = vmax.f32 %v1033_v33, 0.0 }
 0x161   : >> { %v1075_v48 = vadd.f32 %v1071_v17, %v1067_v27  ;;  %v1084_v54 = vadd.f32 %v1080_v2, %v1076_v32  ;;  %v1369_v27 = vld [vmem:[%s5535_s6] sm:$0x1] (%p682_p11)  }
 0x162   : >> { %v1144_v18 = vpop.permute.xlu1 %1143  ;;  %v1107_v19 = vpop.permute.xlu0 %1106 }
 0x163   : >> { %v1149_v61 = vmul.f32 %v5195_v45, %v1144_v18  ;;  %v1116_v18 = vmul.f32 %v5167_v28, %v1107_v19 }
 0x165   : >> { %v1153_v9 = vadd.f32 %v1149_v61, %v1121_v49  ;;  %v1120_v35 = vadd.f32 %v1116_v18, %v1085_v30 }
 0x166   : >> { %v1102_v37 = vpop.permute.xlu1 %1101  ;;  %v5228_v38 = vpop.permute.xlu0 %1005 }
 0x167   : >> { %v1079_v4 = vmul.f32 %v5157_v62, %v5228_v38  ;;  %v1115_v7 = vmul.f32 %v5167_v28, %v1102_v37  ;;  %v1027_v25 = vmul.f32 %v5205_v5, %v5228_v38 }
 0x169   : >> { %v1083_v56 = vadd.f32 %v1079_v4, %v1075_v48  ;;  %v1119_v22 = vadd.f32 %v1115_v7, %v1084_v54 }
 0x16a   : >> { %v1176_v53 = vpop.permute.xlu1 %1175  ;;  %v1139_v57 = vpop.permute.xlu0 %1138 }
 0x16b   : >> { %v1181_v60 = vmul.f32 %v5205_v5, %v1176_v53  ;;  %v1148_v19 = vmul.f32 %v5195_v45, %v1139_v57 }
 0x16d   : >> { %v1185_v21 = vadd.f32 %v1181_v60, %v1153_v9  ;;  %v1152_v61 = vadd.f32 %v1148_v19, %v1120_v35 }
 0x16e   : >> { %v1134_v14 = vpop.permute.xlu1 %1133  ;;  %v1097_v26 = vpop.permute.xlu0 %1096 }
 0x16f   : >> { %v1189_v31 = vmax.f32 %v1185_v21, 0.0  ;;  %v1114_v62 = vmul.f32 %v5167_v28, %v1097_v26  ;;  %v1147_v55 = vmul.f32 %v5195_v45, %v1134_v14  ;;  %v957_v28 = vadd.f32 %v953_v20, %v917_v29 }
 0x171   : >> { %v1193_v36 = vmax.f32 %v1038_v13, %v1189_v31  ;;  %v1118_v46 = vadd.f32 %v1114_v62, %v1083_v56  ;;  %v994_v24 = vadd.f32 %v990_v8, %v957_v28  ;;  %v1151_v11 = vadd.f32 %v1147_v55, %v1119_v22 }
 0x172   : >> { %v1129_v39 = vpop.permute.xlu1 %1128  ;;  %v1171_v43 = vpop.permute.xlu0 %1170 }
 0x173   : >> { %v1146_v44 = vmul.f32 %v5195_v45, %v1129_v39  ;;  %v1180_v37 = vmul.f32 %v5205_v5, %v1171_v43  ;;  %4024 = vmatprep.subr.msk.mxu0 %vm1201_vm9, %v1193_v36  ;;  %4035 = vmatprep.subr.msk.mxu1 %vm1201_vm9, %v1193_v36  ;;  %v1032_v45 = vadd.f32 %v1028_v58, %v995_v47 }
 0x174   : >> { %4025 = vmatpush3.msk.msra.mxu0 %vm1201_vm9, %v1193_v36  ;;  %4036 = vmatpush3.msk.msra.mxu1 %vm1201_vm9, %v1193_v36  ;;  %v1031_v57 = vadd.f32 %v1027_v25, %v994_v24 }
 0x175   : >> { %v1184_v0 = vadd.f32 %v1180_v37, %v1152_v61  ;;  %v1150_v52 = vadd.f32 %v1146_v44, %v1118_v46  ;;  %v1036_v60 = vmax.f32 %v1032_v45, 0.0 }
 0x176   : >> { %v1161_v49 = vpop.permute.xlu1 %1160  ;;  %v1166_v51 = vpop.permute.xlu0 %1165  ;;  %v1035_v63 = vmax.f32 %v1031_v57, 0.0 }
 0x177   : >> { %v1188_v42 = vmax.f32 %v1184_v0, 0.0  ;;  %v1178_v50 = vmul.f32 %v5205_v5, %v1161_v49  ;;  %v1179_v53 = vmul.f32 %v5205_v5, %v1166_v51 }
 0x179   : >> { %v1192_v29 = vmax.f32 %v1037_v59, %v1188_v42  ;;  %v1182_v6 = vadd.f32 %v1178_v50, %v1150_v52  ;;  %v1183_v9 = vadd.f32 %v1179_v53, %v1151_v11 }
 0x17b   : >> { %v1186_v38 = vmax.f32 %v1182_v6, 0.0  ;;  %v1187_v34 = vmax.f32 %v1183_v9, 0.0  ;;  %4026 = vmatprep.subr.mxu0 %v1192_v29  ;;  %4037 = vmatprep.subr.mxu1 %v1192_v29 }
 0x17c   : >> { %4027 = vmatpush3.msra.mxu0 %v1192_v29  ;;  %4038 = vmatpush3.msra.mxu1 %v1192_v29 }
 0x17d   : >> { %v1191_v12 = vmax.f32 %v1036_v60, %v1187_v34  ;;  %v1190_v17 = vmax.f32 %v1035_v63, %v1186_v38 }
 0x17f   : >> { %4028 = vmatprep.subr.mxu0 %v1191_v12  ;;  %4039 = vmatprep.subr.mxu1 %v1191_v12 }
 0x180   : >> { %4029 = vmatpush3.msra.mxu0 %v1191_v12  ;;  %4040 = vmatpush3.msra.mxu1 %v1191_v12 }
 0x181   : >> { %4030 = vmatprep.subr.mxu0 %v1190_v17  ;;  %4041 = vmatprep.subr.mxu1 %v1190_v17 }
 0x182   : >> { %4031 = vmatpush3.msra.mxu0 %v1190_v17  ;;  %4042 = vmatpush3.msra.mxu1 %v1190_v17 }
 0x183   : >> { %4033 = vmatmul.mubr.msk.f32.vlgmr.msra.gmra.mxu0 %vm1194_vm8, %v4786_v15  ;;  %4044 = vmatmul.mubr.msk.f32.vlgmr.msra.gmra.mxu1 %vm1194_vm8, %v4805_v23 }
 0x243   : >> { %v4034_v5 = vpop.f32.mrf.mxu0  ;;  %v4045_v13 = vpop.f32.mrf.mxu1 }
 0x244   : >> { %v1362_v40 = vmax.f32 %v4034_v5, %v4045_v13  ;;  %684 = sbr.rel (!%p682_p11) target bundleno = 152 (0x98), region = 122 }
 0x245   : >> { %v1271_v18 = vpop.f32.mrf.mxu0  ;;  %v1352_v21 = vpop.f32.mrf.mxu1 }
 0x246   : >> { %v1361_v41 = vmax.f32 %v1271_v18, %v1352_v21  ;;  %3818 = vst.msk [vmem:[%s3665_s22 + $0x19] sm:$0x3f] %vm1367_vm10, %v1362_v40 }
 0x248   : >> { %3817 = vst.msk [vmem:[%s3665_s22 + $0x11] sm:$0xff] %vm421_vm2, %v1361_v41 }
 0x249 LB: >> { %v5300_v1 = vld [vmem:[%s5532_s3] sm:$0xff]  ;;  %v5305_v15 = vld [vmem:[%s5532_s3 + $0x8] sm:$0xff]  ;;  %v5310_v23 = vld [vmem:[%s5532_s3 + $0x10] sm:$0xff]  ;;  %s3927_s22 = sshll.u32 %s4353_s14, 5  ;;  %v4357_v0 = vmov 0.0   ;;  %vm4358_vm11 = vmmov 0   ;;  %s4353_s14 = sphi %s5289_s14, %s1375_s14   ;;  %v4349_v27 = vphi %v1369_v27, %v5539_v27  }
 0x24a   : >> { %4046 = vmatprep.subr.mxu0 %v5300_v1  ;;  %4051 = vmatprep.subr.mxu1 %v5305_v15  ;;  %v5317_v2 = vld [vmem:[%s5532_s3 + $0x18] sm:$0xff]  ;;  %s5324_s8 = scalar_lea.vmem [#allocation3], %s3927_s22  ;;  %v3839_v19 = vld [vmem:[%s5532_s3 + $0x20] sm:$0xff]  ;;  %v5342_v32 = vld [vmem:[%s5532_s3 + $0x28] sm:$0xff]  ;;  %vm2905_vm12 = vcmask 1045504   ;;  %vm2901_vm13 = vcmask 113664  }
 0x24b   : >> { %4047 = vmatpush3.msra.mxu0 %v5300_v1  ;;  %4052 = vmatpush3.msra.mxu1 %v5305_v15  ;;  %v3851_v35 = vld [vmem:[%s5532_s3 + $0x30] sm:$0xff]  ;;  %v3856_v36 = vld [vmem:[%s5532_s3 + $0x38] sm:$0xff]  ;;  %v3861_v55 = vld [vmem:[%s5532_s3 + $0x40] sm:$0xff]  ;;  %vm3058_vm14 = vcmask 130048  }
 0x24c   : >> { %4056 = vmatprep.subr.mxu0 %v5310_v23  ;;  %4061 = vmatprep.subr.mxu1 %v5317_v2 }
 0x24f   : >> { %v1387_v4 = vld [vmem:[%s5324_s8] sm:$0xff]  ;;  %v1388_v26 = vld [vmem:[%s5324_s8 + $0x8] sm:$0x3f]  ;;  %v3832_v31 = vld [vmem:[%s5324_s8 + $0x10] sm:$0xff] }
 0x250   : >> { %v1473_v14 = vld [vmem:[%s5324_s8 + $0x1] sm:$0xff]  ;;  %4048 = vmatprep.mubr.msk.f32.mxu0 %vm421_vm2, %v1387_v4  ;;  %v1474_v20 = vld [vmem:[%s5324_s8 + $0x9] sm:$0x3f]  ;;  %v3833_v48 = vld [vmem:[%s5324_s8 + $0x18] sm:$0x3f] }
 0x251   : >> { %4053 = vmatprep.mubr.msk.f32.mxu1 %vm421_vm2, %v1473_v14  ;;  %v1560_v30 = vld [vmem:[%s5324_s8 + $0x2] sm:$0xff]  ;;  %4049 = vmatmul.mubr.msk.f32.vlgmr.msra.gmra.mxu0 %vm421_vm2, %v1388_v26  ;;  %v1561_v33 = vld [vmem:[%s5324_s8 + $0xa] sm:$0x3f]  ;;  %v3837_v7 = vld [vmem:[%s5324_s8 + $0x11] sm:$0xff] }
 0x252   : >> { %4054 = vmatmul.mubr.msk.f32.vlgmr.msra.gmra.mxu1 %vm421_vm2, %v1474_v20  ;;  %4057 = vmatpush3.msra.mxu0 %v5310_v23  ;;  %v3842_v58 = vld [vmem:[%s5324_s8 + $0x12] sm:$0xff]  ;;  %v3843_v54 = vld [vmem:[%s5324_s8 + $0x1a] sm:$0x3f]  ;;  %v3849_v8 = vld [vmem:[%s5324_s8 + $0x20] sm:$0xff] }
 0x253   : >> { %4058 = vmatprep.mubr.msk.f32.mxu0 %vm421_vm2, %v1560_v30  ;;  %4062 = vmatpush3.msra.mxu1 %v5317_v2  ;;  %v3838_v62 = vld [vmem:[%s5324_s8 + $0x19] sm:$0x3f]  ;;  %v3854_v56 = vld [vmem:[%s5324_s8 + $0x21] sm:$0xff]  ;;  %v3855_v43 = vld [vmem:[%s5324_s8 + $0x29] sm:$0x3f] }
 0x254   : >> { %4063 = vmatprep.mubr.msk.f32.mxu1 %vm421_vm2, %v3832_v31  ;;  %4066 = vmatprep.subr.mxu0 %v3839_v19  ;;  %v3850_v39 = vld [vmem:[%s5324_s8 + $0x28] sm:$0x3f]  ;;  %v3878_v37 = vld [vmem:[%s5324_s8 + $0x30] sm:$0xff]  ;;  %v3879_v47 = vld [vmem:[%s5324_s8 + $0x38] sm:$0x3f] }
 0x255   : >> { %4071 = vmatprep.subr.mxu1 %v5342_v32  ;;  %4059 = vmatmul.mubr.msk.f32.vlgmr.msra.gmra.mxu0 %vm421_vm2, %v1561_v33  ;;  %v3859_v61 = vld [vmem:[%s5324_s8 + $0x22] sm:$0xff]  ;;  %v3860_v44 = vld [vmem:[%s5324_s8 + $0x2a] sm:$0x3f]  ;;  %v3882_v28 = vld [vmem:[%s5324_s8 + $0x31] sm:$0xff] }
 0x256   : >> { %4064 = vmatmul.mubr.msk.f32.vlgmr.msra.gmra.mxu1 %vm421_vm2, %v3833_v48  ;;  %4067 = vmatpush3.msra.mxu0 %v3839_v19  ;;  %v3886_v22 = vld [vmem:[%s5324_s8 + $0x32] sm:$0xff]  ;;  %v3887_v46 = vld [vmem:[%s5324_s8 + $0x3a] sm:$0x3f] }
 0x257   : >> { %4068 = vmatprep.mubr.msk.f32.mxu0 %vm421_vm2, %v3837_v7  ;;  %4072 = vmatpush3.msra.mxu1 %v5342_v32  ;;  %v3883_v25 = vld [vmem:[%s5324_s8 + $0x39] sm:$0x3f]  ;;  %s3894_s8 = smul.u32 112, %s4353_s14  ;;  %s1375_s14 = sadd.s32 1, %s4353_s14  }
 0x258   : >> { %4073 = vmatprep.mubr.msk.f32.mxu1 %vm421_vm2, %v3842_v58  ;;  %4076 = vmatprep.subr.mxu0 %v3851_v35  ;;  %p1372_p12 = scmp.ge.s32.totalorder %s1375_s14, 7  }
 0x259   : >> { %4081 = vmatprep.subr.mxu1 %v3856_v36  ;;  %4069 = vmatmul.mubr.msk.f32.vlgmr.msra.gmra.mxu0 %vm421_vm2, %v3838_v62  ;;  %s5441_s16 = scalar_lea.vmem %s5534_s5, %s3894_s8  ;;  %vm3607_vm15 = vcmask (%p1372_p12), 73728   ;;  %s3920_s29 = sshll.u32 (%p1372_p12), %s4421_s28, 4 }
 0x25a   : >> { %4074 = vmatmul.mubr.msk.f32.vlgmr.msra.gmra.mxu1 %vm421_vm2, %v3843_v54  ;;  %4077 = vmatpush3.msra.mxu0 %v3851_v35  ;;  %s3620_s19 = scalar_lea.hbm (%p1372_p12), %s5536_s7, %s3920_s29  ;;  %s3622_s20 = sshll.u32 (%p1372_p12), %s5018_s23, 4  ;;  %s3623_s20 = int_to_ptr.vmem [resolvable:$true] %s3622_s20 }
 0x25b   : >> { %4078 = vmatprep.mubr.msk.f32.mxu0 %vm421_vm2, %v3849_v8  ;;  %4082 = vmatpush3.msra.mxu1 %v3856_v36  ;;  %s3610_s21 = scalar_lea.sflag (%p1372_p12), [#allocation5], %s269_s13  ;;  %s4269_s22 = scalar_lea.vmem (%p1372_p12), %s3623_s20, 16 }
 0x25c   : >> { %4083 = vmatprep.mubr.msk.f32.mxu1 %vm421_vm2, %v3854_v56  ;;  %4086 = vmatprep.subr.mxu0 %v3861_v55  ;;  %p4270_p13 = scmp.ne.s32.totalorder (%p1372_p12), %s3623_s20, %s4269_s22  ;;  %s4359_s14 = smov (%p1372_p12), [#allocation4]  }
 0x25d   : >> { %4091 = vmatprep.subr.mxu1 %v5300_v1  ;;  %4079 = vmatmul.mubr.msk.f32.vlgmr.msra.gmra.mxu0 %vm421_vm2, %v3850_v39  ;;  %s4273_s8 = sshll.u32 (%p1372_p12), %s4359_s14, 4  ;;  %s4274_s8 = int_to_ptr.vmem [resolvable:$false] %s4273_s8 }
 0x25e   : >> { %4084 = vmatmul.mubr.msk.f32.vlgmr.msra.gmra.mxu1 %vm421_vm2, %v3855_v43  ;;  %4087 = vmatpush3.msra.mxu0 %v3861_v55  ;;  %p4271_p0 = pnand (%p1372_p12), %p4270_p13, %p4438_p5  ;;  %s4275_s9 = scalar_lea.vmem (%p1372_p12), %s4274_s8, 32 }
 0x25f   : >> { %4088 = vmatprep.mubr.msk.f32.mxu0 %vm421_vm2, %v3859_v61  ;;  %4092 = vmatpush3.msra.mxu1 %v5300_v1  ;;  %p4276_p2 = scmp.lt.s32.totalorder (%p1372_p12), %s3623_s20, %s4274_s8  ;;  %p4277_p3 = scmp.lt.s32.totalorder (%p1372_p12), %s4275_s9, %s4269_s22 }
 0x260   : >> { %4093 = vmatprep.mubr.msk.f32.mxu1 %vm421_vm2, %v3832_v31  ;;  %4096 = vmatprep.subr.mxu0 %v5305_v15  ;;  %p4272_p1 = pneg (%p1372_p12), %p4271_p0 }
 0x261   : >> { %4101 = vmatprep.subr.mxu1 %v5310_v23  ;;  %4089 = vmatmul.mubr.msk.f32.vlgmr.msra.gmra.mxu0 %vm421_vm2, %v3860_v44  ;;  %p4278_p4 = por (%p1372_p12), %p4277_p3, %p4276_p2 }
 0x262   : >> { %4094 = vmatmul.mubr.msk.f32.vlgmr.msra.gmra.mxu1 %vm421_vm2, %v3833_v48  ;;  %4097 = vmatpush3.msra.mxu0 %v5305_v15 }
 0x263   : >> { %4098 = vmatprep.mubr.msk.f32.mxu0 %vm421_vm2, %v3837_v7  ;;  %4102 = vmatpush3.msra.mxu1 %v5310_v23  ;;  %p4279_p7 = pnand (%p1372_p12), %p4278_p4, %p4272_p1 }
 0x264   : >> { %4103 = vmatprep.mubr.msk.f32.mxu1 %vm421_vm2, %v3842_v58  ;;  %4106 = vmatprep.subr.mxu0 %v5317_v2 }
 0x265   : >> { %4111 = vmatprep.subr.mxu1 %v3839_v19  ;;  %4099 = vmatmul.mubr.msk.f32.vlgmr.msra.gmra.mxu0 %vm421_vm2, %v3838_v62 }
 0x266   : >> { %4104 = vmatmul.mubr.msk.f32.vlgmr.msra.gmra.mxu1 %vm421_vm2, %v3843_v54  ;;  %4107 = vmatpush3.msra.mxu0 %v5317_v2 }
 0x267   : >> { %4108 = vmatprep.mubr.msk.f32.mxu0 %vm421_vm2, %v3849_v8  ;;  %4112 = vmatpush3.msra.mxu1 %v3839_v19 }
 0x268   : >> { %4113 = vmatprep.mubr.msk.f32.mxu1 %vm421_vm2, %v3854_v56  ;;  %4116 = vmatprep.subr.mxu0 %v5342_v32 }
 0x269   : >> { %4121 = vmatprep.subr.mxu1 %v3851_v35  ;;  %4109 = vmatmul.mubr.msk.f32.vlgmr.msra.gmra.mxu0 %vm421_vm2, %v3850_v39 }
 0x26a   : >> { %4114 = vmatmul.mubr.msk.f32.vlgmr.msra.gmra.mxu1 %vm421_vm2, %v3855_v43  ;;  %4117 = vmatpush3.msra.mxu0 %v5342_v32 }
 0x26b   : >> { %4118 = vmatprep.mubr.msk.f32.mxu0 %vm421_vm2, %v3859_v61  ;;  %4122 = vmatpush3.msra.mxu1 %v3851_v35 }
 0x26c   : >> { %4123 = vmatprep.mubr.msk.f32.mxu1 %vm421_vm2, %v3878_v37  ;;  %4126 = vmatprep.subr.mxu0 %v3856_v36 }
 0x26d   : >> { %4131 = vmatprep.subr.mxu1 %v3861_v55  ;;  %4119 = vmatmul.mubr.msk.f32.vlgmr.msra.gmra.mxu0 %vm421_vm2, %v3860_v44 }
 0x26e   : >> { %4124 = vmatmul.mubr.msk.f32.vlgmr.msra.gmra.mxu1 %vm421_vm2, %v3879_v47  ;;  %4127 = vmatpush3.msra.mxu0 %v3856_v36 }
 0x26f   : >> { %4128 = vmatprep.mubr.msk.f32.mxu0 %vm421_vm2, %v3882_v28  ;;  %4132 = vmatpush3.msra.mxu1 %v3861_v55 }
 0x270   : >> { %4133 = vmatprep.mubr.msk.f32.mxu1 %vm421_vm2, %v3886_v22  ;;  %4136 = vmatprep.subr.mxu0 %v4357_v0 }
 0x271   : >> { %4129 = vmatmul.mubr.msk.f32.vlgmr.msra.gmra.mxu0 %vm421_vm2, %v3883_v25  ;;  %4143 = vmatprep.subr.mxu1 %v4357_v0 }
 0x272   : >> { %4134 = vmatmul.mubr.msk.f32.vlgmr.msra.gmra.mxu1 %vm421_vm2, %v3887_v46  ;;  %4140 = vmatprep.mubr.msk.f32.mxu0 %vm4358_vm11, %v4357_v0 }
 0x273   : >> { %4147 = vmatprep.mubr.msk.f32.mxu1 %vm4358_vm11, %v4357_v0 }
 0x311   : >> { %v4050_v59 = vpop.f32.mrf.mxu0 }
 0x312   : >> { %v4055_v45 = vpop.f32.mrf.mxu1  ;;  %v1472_v24 = vadd.f32 %v4050_v59, %v4697_v3 }
 0x313   : >> { %v1462_v11 = vpop.f32.mrf.mxu0 }
 0x314   : >> { %v1549_v49 = vpop.f32.mrf.mxu1  ;;  %v1471_v51 = vadd.f32 %v4697_v3, %v1462_v11  ;;  %v1559_v50 = vadd.f32 %v4055_v45, %v1472_v24 }
 0x315   : >> { %v4060_v52 = vpop.f32.mrf.mxu0 }
 0x316   : >> { %v4065_v42 = vpop.f32.mrf.mxu1  ;;  %v1558_v29 = vadd.f32 %v1549_v49, %v1471_v51  ;;  %v1646_v60 = vadd.f32 %v4060_v52, %v1559_v50 }
 0x317   : >> { %v1636_v53 = vpop.f32.mrf.mxu0 }
 0x318   : >> { %v1726_v57 = vpop.f32.mrf.mxu1  ;;  %v1645_v63 = vadd.f32 %v1636_v53, %v1558_v29  ;;  %v1736_v5 = vadd.f32 %v4065_v42, %v1646_v60 }
 0x319   : >> { %v4070_v6 = vpop.f32.mrf.mxu0 }
 0x31a   : >> { %v4075_v9 = vpop.f32.mrf.mxu1  ;;  %v1735_v18 = vadd.f32 %v1726_v57, %v1645_v63  ;;  %v1823_v1 = vadd.f32 %v4070_v6, %v1736_v5  ;;  %v3056_v5 = vld [vmem:[%s5441_s16] sm:$0xff] }
 0x31b   : >> { %v1813_v38 = vpop.f32.mrf.mxu0 }
 0x31c   : >> { %v1900_v34 = vpop.f32.mrf.mxu1  ;;  %v1822_v4 = vadd.f32 %v1813_v38, %v1735_v18  ;;  %v1910_v20 = vadd.f32 %v4075_v9, %v1823_v1  ;;  %v3902_v1 = vld [vmem:[%s5441_s16 + $0x28] sm:$0xff] }
 0x31d   : >> { %v4080_v12 = vpop.f32.mrf.mxu0 }
 0x31e   : >> { %v4085_v17 = vpop.f32.mrf.mxu1  ;;  %v1909_v33 = vadd.f32 %v1900_v34, %v1822_v4  ;;  %v2000_v36 = vadd.f32 %v4080_v12, %v1910_v20  ;;  %v3901_v4 = vld [vmem:[%s5441_s16 + $0x20] sm:$0xff]  ;;  %v3905_v20 = vld [vmem:[%s5441_s16 + $0x30] sm:$0xff] }
 0x31f   : >> { %v1990_v13 = vpop.f32.mrf.mxu0 }
 0x320   : >> { %v2077_v40 = vpop.f32.mrf.mxu1  ;;  %v1999_v55 = vadd.f32 %v1990_v13, %v1909_v33  ;;  %v2087_v37 = vadd.f32 %v4085_v17, %v2000_v36  ;;  %v3057_v17 = vld [vmem:[%s5441_s16 + $0x8] sm:$0xff]  ;;  %v3898_v13 = vld [vmem:[%s5441_s16 + $0x18] sm:$0xff] }
 0x321   : >> { %v4090_v21 = vpop.f32.mrf.mxu0 }
 0x322   : >> { %v4095_v41 = vpop.f32.mrf.mxu1  ;;  %v2086_v46 = vadd.f32 %v2077_v40, %v1999_v55  ;;  %v2174_v49 = vadd.f32 %v4090_v21, %v2087_v37  ;;  %v3897_v40 = vld [vmem:[%s5441_s16 + $0x10] sm:$0xff] }
 0x323   : >> { %v2253_v15 = vadd.f32 %v4095_v41, %v4697_v3  ;;  %v2164_v23 = vpop.f32.mrf.mxu0 }
 0x324   : >> { %v2243_v2 = vpop.f32.mrf.mxu1  ;;  %v2173_v50 = vadd.f32 %v2164_v23, %v2086_v46  ;;  %v2176_v6 = vmax.f32 %v2174_v49, 0.0 }
 0x325   : >> { %v4100_v14 = vpop.f32.mrf.mxu0  ;;  %v2252_v30 = vadd.f32 %v4697_v3, %v2243_v2 }
 0x326   : >> { %v4105_v26 = vpop.f32.mrf.mxu1  ;;  %v2330_v31 = vadd.f32 %v4100_v14, %v2253_v15  ;;  %v2175_v38 = vmax.f32 %v2173_v50, 0.0  ;;  %v3906_v14 = vld [vmem:[%s5441_s16 + $0x38] sm:$0xff] }
 0x327   : >> { %v2320_v19 = vpop.f32.mrf.mxu0 }
 0x328   : >> { %v2397_v32 = vpop.f32.mrf.mxu1  ;;  %v2407_v48 = vadd.f32 %v4105_v26, %v2330_v31  ;;  %v2329_v7 = vadd.f32 %v2320_v19, %v2252_v30  ;;  %v3910_v30 = vld [vmem:[%s5441_s16 + $0x48] sm:$0xff]  ;;  %v3909_v19 = vld [vmem:[%s5441_s16 + $0x40] sm:$0xff] }
 0x329   : >> { %v4110_v58 = vpop.f32.mrf.mxu0 }
 0x32a   : >> { %v4115_v35 = vpop.f32.mrf.mxu1  ;;  %v2406_v62 = vadd.f32 %v2397_v32, %v2329_v7  ;;  %v2484_v54 = vadd.f32 %v4110_v58, %v2407_v48  ;;  %v3914_v32 = vld [vmem:[%s5441_s16 + $0x58] sm:$0xff]  ;;  %v3913_v48 = vld [vmem:[%s5441_s16 + $0x50] sm:$0xff]  ;;  %v3918_v7 = vld [vmem:[%s5441_s16 + $0x68] sm:$0xff] }
 0x32b   : >> { %v2474_v8 = vpop.f32.mrf.mxu0 }
 0x32c   : >> { %v2551_v56 = vpop.f32.mrf.mxu1  ;;  %v2561_v39 = vadd.f32 %v4115_v35, %v2484_v54  ;;  %v2483_v43 = vadd.f32 %v2474_v8, %v2406_v62  ;;  %v3917_v35 = vld [vmem:[%s5441_s16 + $0x60] sm:$0xff] }
 0x32d   : >> { %v4120_v61 = vpop.f32.mrf.mxu0 }
 0x32e   : >> { %v4125_v44 = vpop.f32.mrf.mxu1  ;;  %v2560_v47 = vadd.f32 %v2551_v56, %v2483_v43  ;;  %v2638_v28 = vadd.f32 %v4120_v61, %v2561_v39 }
 0x32f   : >> { %v2628_v22 = vpop.f32.mrf.mxu0 }
 0x330   : >> { %v2716_v25 = vpop.f32.mrf.mxu1  ;;  %v2726_v59 = vadd.f32 %v4125_v44, %v2638_v28  ;;  %v2637_v45 = vadd.f32 %v2628_v22, %v2560_v47 }
 0x331   : >> { %v4130_v24 = vpop.f32.mrf.mxu0 }
 0x332   : >> { %v4135_v11 = vpop.f32.mrf.mxu1  ;;  %v2725_v51 = vadd.f32 %v2716_v25, %v2637_v45  ;;  %v2811_v52 = vadd.f32 %v4130_v24, %v2726_v59 }
 0x333   : >> { %v2801_v42 = vpop.f32.mrf.mxu0 }
 0x334   : >> { %v2896_v53 = vadd.f32 %v4135_v11, %v2811_v52  ;;  %v2810_v57 = vadd.f32 %v2801_v42, %v2725_v51  ;;  %v2886_v29 = vpop.f32.mrf.mxu1 }
 0x336   : >> { %v2898_v9 = vmax.f32 %v2896_v53, 0.0  ;;  %v2895_v60 = vadd.f32 %v2886_v29, %v2810_v57 }
 0x338   : >> { %v2900_v34 = vmax.f32 %v2176_v6, %v2898_v9  ;;  %v2897_v63 = vmax.f32 %v2895_v60, 0.0 }
 0x33a   : >> { %v2899_v12 = vmax.f32 %v2175_v38, %v2897_v63  ;;  %4137 = vmatpush3.msk.msra.mxu0 %vm2905_vm12, %v2900_v34  ;;  %4144 = vmatpush3.msk.msra.mxu1 %vm2905_vm12, %v2900_v34 }
 0x33b   : >> { %4138 = vmatprep.subr.mxu0 %v4357_v0  ;;  %4145 = vmatprep.subr.mxu1 %v4357_v0 }
 0x33c   : >> { %4139 = vmatpush3.msra.mxu0 %v2899_v12  ;;  %4146 = vmatpush3.msra.mxu1 %v2899_v12 }
 0x33d   : >> { %4141 = vmatmul.mubr.msk.f32.vlgmr.msra.gmra.mxu0 %vm2901_vm13, %v4773_v10  ;;  %4148 = vmatmul.mubr.msk.f32.vlgmr.msra.gmra.mxu1 %vm2901_vm13, %v4789_v16 }
 0x33e   : >> { %4150 = vmatprep.subr.mxu0 %v4357_v0  ;;  %4157 = vmatprep.subr.mxu1 %v4357_v0 }
 0x33f   : >> { %4154 = vmatprep.mubr.msk.f32.mxu0 %vm4358_vm11, %v4357_v0  ;;  %4161 = vmatprep.mubr.msk.f32.mxu1 %vm4358_vm11, %v4357_v0 }
 0x340   : >> { %4151 = vmatpush3.msra.mxu0 %v3057_v17  ;;  %4158 = vmatpush3.msra.mxu1 %v3898_v13 }
 0x341   : >> { %4152 = vmatprep.subr.mxu0 %v4357_v0  ;;  %4159 = vmatprep.subr.mxu1 %v4357_v0 }
 0x342   : >> { %4153 = vmatpush3.msra.mxu0 %v3056_v5  ;;  %4160 = vmatpush3.msra.mxu1 %v3897_v40 }
 0x343   : >> { %4164 = vmatprep.subr.mxu0 %v4357_v0  ;;  %4171 = vmatprep.subr.mxu1 %v4357_v0 }
 0x3fd   : >> { %v2975_v18 = vpop.f32.mrf.mxu0  ;;  %v3048_v21 = vpop.f32.mrf.mxu1 }
 0x3fe   : >> { %v3052_v41 = vmax.f32 %v2975_v18, %v3048_v21 }
 0x3ff   : >> { %v4142_v15 = vpop.f32.mrf.mxu0  ;;  %v4149_v23 = vpop.f32.mrf.mxu1 }
 0x400   : >> { %4155 = vmatmul.mubr.msk.f32.vlgmr.msra.gmra.mxu0 %vm3058_vm14, %v3052_v41  ;;  %v3138_v2 = vrot.slane %v3052_v41, 1  ;;  %v3217_v26 = vrot.slane %v3052_v41, 2  ;;  %v3296_v31 = vrot.slane %v3052_v41, 3  ;;  %v3375_v33 = vrot.slane %v3052_v41, 4 }
 0x401   : >> { %4165 = vmatpush3.msra.mxu0 %v3902_v1  ;;  %4168 = vmatprep.mubr.msk.f32.mxu0 %vm4358_vm11, %v4357_v0  ;;  %v3454_v58 = vrot.slane %v3052_v41, 5  ;;  %v3533_v36 = vrot.slane %v3052_v41, 6 }
 0x402   : >> { %4162 = vmatmul.mubr.msk.f32.vlgmr.msra.gmra.mxu1 %vm3058_vm14, %v3138_v2  ;;  %4166 = vmatprep.subr.mxu0 %v4357_v0 }
 0x403   : >> { %4167 = vmatpush3.msra.mxu0 %v3901_v4  ;;  %4172 = vmatpush3.msra.mxu1 %v3906_v14 }
 0x404   : >> { %4169 = vmatmul.mubr.msk.f32.vlgmr.msra.gmra.mxu0 %vm3058_vm14, %v3217_v26  ;;  %4173 = vmatprep.subr.mxu1 %v4357_v0 }
 0x405   : >> { %4178 = vmatprep.subr.mxu0 %v4357_v0  ;;  %4174 = vmatpush3.msra.mxu1 %v3905_v20 }
 0x406   : >> { %4175 = vmatprep.mubr.msk.f32.mxu1 %vm4358_vm11, %v4357_v0  ;;  %4179 = vmatpush3.msra.mxu0 %v3910_v30 }
 0x407   : >> { %4176 = vmatmul.mubr.msk.f32.vlgmr.msra.gmra.mxu1 %vm3058_vm14, %v3296_v31  ;;  %4180 = vmatprep.subr.mxu0 %v4357_v0 }
 0x408   : >> { %4185 = vmatprep.subr.mxu1 %v4357_v0  ;;  %4181 = vmatpush3.msra.mxu0 %v3909_v19 }
 0x409   : >> { %4182 = vmatprep.mubr.msk.f32.mxu0 %vm4358_vm11, %v4357_v0  ;;  %4186 = vmatpush3.msra.mxu1 %v3914_v32 }
 0x40a   : >> { %4183 = vmatmul.mubr.msk.f32.vlgmr.msra.gmra.mxu0 %vm3058_vm14, %v3375_v33  ;;  %4187 = vmatprep.subr.mxu1 %v4357_v0 }
 0x40b   : >> { %4192 = vmatprep.subr.mxu0 %v4357_v0  ;;  %4188 = vmatpush3.msra.mxu1 %v3913_v48 }
 0x40c   : >> { %4189 = vmatprep.mubr.msk.f32.mxu1 %vm4358_vm11, %v4357_v0  ;;  %4193 = vmatpush3.msra.mxu0 %v3918_v7 }
 0x40d   : >> { %4190 = vmatmul.mubr.msk.f32.vlgmr.msra.gmra.mxu1 %vm3058_vm14, %v3454_v58  ;;  %4194 = vmatprep.subr.mxu0 %v4357_v0 }
 0x40e   : >> { %4195 = vmatpush3.msra.mxu0 %v3917_v35  ;;  %4196 = vmatprep.mubr.msk.f32.mxu0 %vm4358_vm11, %v4357_v0 }
 0x40f   : >> { %4197 = vmatmul.mubr.msk.f32.vlgmr.msra.gmra.mxu0 %vm3058_vm14, %v3533_v36 }
 0x4c0   : >> { %v3128_v62 = vpop.f32.mrf.mxu0 }
 0x4c1   : >> { %v3132_v54 = vadd.f32 %v4349_v27, %v3128_v62 }
 0x4c2   : >> { %v4156_v8 = vpop.f32.mrf.mxu0  ;;  %v3207_v56 = vpop.f32.mrf.mxu1 }
 0x4c3   : >> { %v3211_v55 = vadd.f32 %v3207_v56, %v3132_v54 }
 0x4c4   : >> { %v4163_v39 = vpop.f32.mrf.mxu1  ;;  %v3286_v43 = vpop.f32.mrf.mxu0 }
 0x4c5   : >> { %v3290_v61 = vadd.f32 %v3286_v43, %v3211_v55 }
 0x4c6   : >> { %v4170_v44 = vpop.f32.mrf.mxu0 }
 0x4c7   : >> { %v3365_v37 = vpop.f32.mrf.mxu1 }
 0x4c8   : >> { %v3369_v47 = vadd.f32 %v3365_v37, %v3290_v61 }
 0x4c9   : >> { %v4177_v28 = vpop.f32.mrf.mxu1 }
 0x4ca   : >> { %v3444_v22 = vpop.f32.mrf.mxu0 }
 0x4cb   : >> { %v3448_v25 = vadd.f32 %v3444_v22, %v3369_v47 }
 0x4cc   : >> { %v4184_v46 = vpop.f32.mrf.mxu0 }
 0x4cd   : >> { %v3523_v59 = vpop.f32.mrf.mxu1 }
 0x4ce   : >> { %v3527_v0 = vadd.f32 %v3523_v59, %v3448_v25  ;;  %1374 = sbr.rel (!%p1372_p12) target bundleno = 585 (0x249), region = 133 }
 0x4cf   : >> { %v4191_v45 = vpop.f32.mrf.mxu1  ;;  %v3602_v24 = vpop.f32.mrf.mxu0 }
 0x4d0   : >> { %v3606_v11 = vadd.f32 %v3602_v24, %v3527_v0  }
 0x4d1   : >> { %v4198_v49 = vpop.f32.mrf.mxu0 }
 0x4d2   : >> { %v5539_v27 = vmov %v3606_v11  ;;  %3608 = vst.msk [vmem:[%s5018_s23] sm:$0x1] (%p1372_p12), %vm3607_vm15, %v3606_v11 }
 0x4d3   : > { %4282 = shalt.err (!%p4279_p7)
}
 0x4d4   : > { %s4283_s28 = scalar_lea.hbm %s3620_s19, 16  ;;  %s4287_s15 = scalar_lea.hbm %s5536_s7, 32 }
 0x4d5   : > { %p4284_p8 = scmp.ne.s32.totalorder %s3620_s19, %s4283_s28  ;;  %p4288_p11 = scmp.lt.s32.totalorder %s3620_s19, %s5536_s7 }
 0x4d6   : > { %p4289_p12 = scmp.lt.s32.totalorder %s4287_s15, %s4283_s28 }
 0x4d7   : > { %p4285_p9 = pnand %p4284_p8, %p4438_p5 }
 0x4d8   : > { %p4290_p13 = por %p4289_p12, %p4288_p11 }
 0x4d9   : > { %p4286_p10 = pneg %p4285_p9 }
 0x4db   : > { %p4291_p0 = pnand %p4290_p13, %p4286_p10 }
 0x4dd   : > { %4294 = shalt.err (!%p4291_p0)
}
 0x4de   : > { %4200 = dma.vmem_to_hbm [thread:$0]  (%p4438_p5), %s3623_s20, 16, %s3620_s19, %s3610_s21  }
 0x4df PF: > { %p4206_p1 = scmp.ge.s32.totalorder %s4341_s27, 2  ;;  %s3634_s17 = sand.u32 1, %s4329_s24  }
 0x4e0   : > { %s3635_s18 = scalar_lea.sflag [#allocation5], %s3634_s17 }
 0x4e1   : > { %p4203_p2 = pnand %p4206_p1, %p4442_p6 }
 0x4e3   : > { %p4204_p3 = pneg %p4203_p2 }
 0x4e5   : > { %4324 = dma.done.wait (%p4204_p3), %s3635_s18, 16  }
 0x4e6   : > { %4326 = vsyncadd (%p4204_p3), %s3635_s18, 4294967280  ;;  %p17_p4 = scmp.ge.s32.totalorder %s4425_s30, 4   ;;  %s5540_s24 = smov %s4333_s25 }
 0x4e7   : > { %s5541_s25 = smov %s4337_s26  ;;  %s5542_s26 = smov %s4436_s10 }
 0x4e8   : > { %s5543_s27 = smov %s4425_s30  ;;  %19 = sbr.rel (!%p17_p4) target bundleno = 3 (0x3), region = 144 }
 0x4ed   :  { %3639 = vsyncpa [#allocation5], 1 }
 0x4ee   :  { %3641 = vsyncpa [#allocation5 + $0x1], 1 }

</bundles_post_ra>
